<compile_context>
chip_gen: v7x
topology: tpu7x:2x2x1
jax: 0.10.0
libtpu: 0.0.40
codegen_flags: <defaults>
</compile_context>

<pallas_src>
import functools

import jax
import jax.numpy as jnp
from jax import lax
from jax.experimental import pallas as pl
from jax.experimental.pallas import tpu as pltpu


# ---------------------------------------------------------------------------
# Kernel 1: char CNN — conv(1,k) as k accumulated matmuls, ReLU + max-pool over
#           word positions.  Output lane-padded to 128 for dense stores.
# ---------------------------------------------------------------------------
def _char_cnn_kernel(x_ref, w_ref, b_ref, o_ref, *, k, t):
    # x: (TN, W, C) bf16   w: (k, C, OP) bf16   b: (1, OP) f32   o: (TN, OP) bf16
    x = x_ref[...]
    acc = jnp.einsum("ntc,co->nto", x[:, 0:t, :], w_ref[0],
                     preferred_element_type=jnp.float32)
    for j in range(1, k):
        acc += jnp.einsum("ntc,co->nto", x[:, j:j + t, :], w_ref[j],
                          preferred_element_type=jnp.float32)
    h = jax.nn.relu(acc + b_ref[...][None, :, :])
    o_ref[...] = jnp.max(h, axis=1).astype(o_ref.dtype)


def char_cnn(x_bf16, w_bf16, b, *, k):
    n, w_len, c = x_bf16.shape
    op = w_bf16.shape[-1]
    t = w_len - k + 1
    tile_n = n if n <= 256 else 256
    return pl.pallas_call(
        functools.partial(_char_cnn_kernel, k=k, t=t),
        out_shape=jax.ShapeDtypeStruct((n, op), jnp.bfloat16),
        grid=(pl.cdiv(n, tile_n),),
        in_specs=[
            pl.BlockSpec((tile_n, w_len, c), lambda i: (i, 0, 0)),
            pl.BlockSpec((k, c, op), lambda i: (0, 0, 0)),
            pl.BlockSpec((1, op), lambda i: (0, 0)),
        ],
        out_specs=pl.BlockSpec((tile_n, op), lambda i: (i, 0)),
        compiler_params=pltpu.CompilerParams(dimension_semantics=("parallel",)),
    )(x_bf16, w_bf16, b)


# ---------------------------------------------------------------------------
# Kernel 2: folded BN + input2mod + LSTM input projection (both directions).
#           bf16 in / bf16 out; rows are time-major (S*B), so the reshape to
#           (S, B, 4H) afterwards is free (no transpose).
# ---------------------------------------------------------------------------
def _gate_proj_kernel(x_ref, wf_ref, wb_ref, bf_ref, bb_ref, gf_ref, gb_ref):
    x = x_ref[...]                                              # (TN, F) bf16
    gf_ref[...] = (jnp.dot(x, wf_ref[...], preferred_element_type=jnp.float32)
                   + bf_ref[...]).astype(gf_ref.dtype)
    gb_ref[...] = (jnp.dot(x, wb_ref[...], preferred_element_type=jnp.float32)
                   + bb_ref[...]).astype(gb_ref.dtype)


def gate_projection(x2d_bf16, w_f, w_b, b_f, b_b):
    n, f = x2d_bf16.shape
    g = w_f.shape[1]
    tile_n = n if n <= 512 else 512
    out_sds = jax.ShapeDtypeStruct((n, g), jnp.bfloat16)
    return pl.pallas_call(
        _gate_proj_kernel,
        out_shape=(out_sds, out_sds),
        grid=(pl.cdiv(n, tile_n),),
        in_specs=[
            pl.BlockSpec((tile_n, f), lambda i: (i, 0)),
            pl.BlockSpec((f, g), lambda i: (0, 0)),
            pl.BlockSpec((f, g), lambda i: (0, 0)),
            pl.BlockSpec((1, g), lambda i: (0, 0)),
            pl.BlockSpec((1, g), lambda i: (0, 0)),
        ],
        out_specs=(pl.BlockSpec((tile_n, g), lambda i: (i, 0)),
                   pl.BlockSpec((tile_n, g), lambda i: (i, 0))),
        compiler_params=pltpu.CompilerParams(dimension_semantics=("parallel",)),
    )(x2d_bf16, w_f, w_b, b_f, b_b)


# ---------------------------------------------------------------------------
# Kernel 3: fused bidirectional LSTM recurrence, gridded over batch blocks.
#   gates_f/gates_b: (S, TB, 4H) bf16 time-major, gate order [i f g o].
#   Forward reads gates_f[t]; backward reads gates_b[S-1-t] (no select, no
#   wasted loads).  bf16 MXU operands, f32 state/accumulation, unroll=4.
#   Outputs (tanh applied) are bf16; out_b is stored back into original time
#   order (index S-1-t) so downstream needs no reversal.
# ---------------------------------------------------------------------------
def _bilstm_kernel(gf_ref, gb_ref, h0_ref, c0_ref, whf_ref, whb_ref,
                   of_ref, ob_ref, *, hid):
    s_len = gf_ref.shape[0]
    whh_f = whf_ref[...]                                 # (H,4H) bf16, hoisted
    whh_b = whb_ref[...]

    def cell(g, c):
        i = jax.nn.sigmoid(g[:, 0:hid])
        f = jax.nn.sigmoid(g[:, hid:2 * hid])
        gg = jnp.tanh(g[:, 2 * hid:3 * hid])
        o = jax.nn.sigmoid(g[:, 3 * hid:4 * hid])
        c_new = f * c + i * gg
        return o * jnp.tanh(c_new), c_new

    def step(t, carry):
        hf, cf, hb, cb = carry                           # (TB, H) f32 each
        rev = s_len - 1 - t
        g_f = gf_ref[t].astype(jnp.float32) + jnp.dot(
            hf.astype(jnp.bfloat16), whh_f, preferred_element_type=jnp.float32)
        g_b = gb_ref[rev].astype(jnp.float32) + jnp.dot(
            hb.astype(jnp.bfloat16), whh_b, preferred_element_type=jnp.float32)
        hf_n, cf_n = cell(g_f, cf)
        hb_n, cb_n = cell(g_b, cb)
        of_ref[t] = jnp.tanh(hf_n).astype(of_ref.dtype)  # model: tanh(lstm_out)
        ob_ref[rev] = jnp.tanh(hb_n).astype(ob_ref.dtype)
        return hf_n, cf_n, hb_n, cb_n

    lax.fori_loop(0, s_len, step,
                  (h0_ref[0], c0_ref[0], h0_ref[1], c0_ref[1]), unroll=4)


def bilstm_fused(gates_f, gates_b, h0, c0, whh_f_bf, whh_b_bf, hid):
    s_len, bsz, g4 = gates_f.shape
    tb = bsz if bsz <= 8 else 8
    out_sds = jax.ShapeDtypeStruct((s_len, bsz, hid), jnp.bfloat16)
    return pl.pallas_call(
        functools.partial(_bilstm_kernel, hid=hid),
        out_shape=(out_sds, out_sds),
        grid=(pl.cdiv(bsz, tb),),
        in_specs=[
            pl.BlockSpec((s_len, tb, g4), lambda b: (0, b, 0)),
            pl.BlockSpec((s_len, tb, g4), lambda b: (0, b, 0)),
            pl.BlockSpec((2, tb, hid), lambda b: (0, b, 0)),
            pl.BlockSpec((2, tb, hid), lambda b: (0, b, 0)),
            pl.BlockSpec((hid, g4), lambda b: (0, 0)),
            pl.BlockSpec((hid, g4), lambda b: (0, 0)),
        ],
        out_specs=(pl.BlockSpec((s_len, tb, hid), lambda b: (0, b, 0)),
                   pl.BlockSpec((s_len, tb, hid), lambda b: (0, b, 0))),
        compiler_params=pltpu.CompilerParams(dimension_semantics=("parallel",)),
    )(gates_f, gates_b, h0, c0, whh_f_bf, whh_b_bf)


# ---------------------------------------------------------------------------
# Kernel 4: dot attention (additive key-pad bias, no (B,S,S) mask) +
#           hid2emission (lane-padded to 128) + ReLU.  Grid over batch.
# ---------------------------------------------------------------------------
def _atten_emission_kernel(x_ref, kp_ref, w_ref, b_ref, o_ref):
    # x: (S, 2H) bf16   kp: (1, S) f32   w: (2H, LP) bf16   b: (1, LP) f32
    hq = x_ref[...]
    scores = jnp.einsum("qd,kd->qk", hq, hq, preferred_element_type=jnp.float32)
    scores = scores + kp_ref[...] * jnp.float32(-1e9)    # mask padded keys
    m = jnp.max(scores, axis=-1, keepdims=True)
    e = jnp.exp(scores - m)
    attn = e * pl.reciprocal(jnp.sum(e, axis=-1, keepdims=True), approx=True)
    ctx = jnp.dot(attn.astype(jnp.bfloat16), hq, preferred_element_type=jnp.float32)
    em = jnp.dot(ctx.astype(jnp.bfloat16), w_ref[...],
                 preferred_element_type=jnp.float32) + b_ref[...]
    o_ref[...] = jax.nn.relu(em)


def atten_emission(lstm_bm, keypad, w_pad_bf16, b_pad):
    bsz, s_len, d = lstm_bm.shape
    lp = w_pad_bf16.shape[1]
    return pl.pallas_call(
        _atten_emission_kernel,
        out_shape=jax.ShapeDtypeStruct((bsz, s_len, lp), jnp.float32),
        grid=(bsz,),
        in_specs=[
            pl.BlockSpec((None, s_len, d), lambda b: (b, 0, 0)),
            pl.BlockSpec((None, 1, s_len), lambda b: (b, 0, 0)),
            pl.BlockSpec((d, lp), lambda b: (0, 0)),
            pl.BlockSpec((1, lp), lambda b: (0, 0)),
        ],
        out_specs=pl.BlockSpec((None, s_len, lp), lambda b: (b, 0, 0)),
        compiler_params=pltpu.CompilerParams(dimension_semantics=("parallel",)),
    )(lstm_bm, keypad, w_pad_bf16, b_pad)


# ---------------------------------------------------------------------------
# Full forward (glue = embedding lookups, weight folding, small relayouts)
# ---------------------------------------------------------------------------
def bilstm_atten_soft_forward(params, char_data, word_data, pos_data, case_data,
                              pad_idx):
    B, S = word_data.shape
    W = char_data.shape[2]
    K = params["cnn_k"]
    H = params["whh_f"].shape[0]

    # Time-major index arrays (tiny int transposes) so every activation downstream
    # is produced directly in (S, B, ...) layout -> no activation-sized transposes.
    word_t = word_data.T                                        # (S, B)
    char_t = jnp.transpose(char_data, (1, 0, 2))                # (S, B, W)

    # embedding lookups -> bf16 activations (cast fused into the XLA gather/concat)
    char_emb = jnp.take(params["char_table"], char_t, axis=0).astype(jnp.bfloat16)
    word_feat = jnp.take(params["word_table"], word_t, axis=0).astype(jnp.bfloat16)
    pos_feat = jnp.take(params["pos_table"], pos_data.T, axis=0).astype(jnp.bfloat16)
    case_feat = jnp.take(params["case_table"], case_data.T, axis=0).astype(jnp.bfloat16)

    # char CNN (k accumulated taps, lane-padded output)
    C = char_emb.shape[-1]
    cnn_out = params["w_cnn"].shape[-1]
    OP = ((cnn_out + 127) // 128) * 128
    w_cnn_pad = (jnp.zeros((K, C, OP), jnp.float32)
                 .at[:, :, :cnn_out].set(params["w_cnn"]).astype(jnp.bfloat16))
    b_cnn_pad = jnp.zeros((1, OP), jnp.float32).at[:, :cnn_out].set(params["b_cnn"])
    char_rows = char_emb.reshape(S * B, W, C)
    char_feat = char_cnn(char_rows, w_cnn_pad, b_cnn_pad, k=K)
    char_feat = char_feat.reshape(S, B, OP)[:, :, :cnn_out]

    # feature fusion; dropout -> identity at inference; bf16, time-major
    fused = jnp.concatenate([word_feat, char_feat, pos_feat, case_feat], axis=-1)
    F = fused.shape[-1]

    # fold BatchNorm1d (eval) + input2mod + per-direction LSTM input weights
    scale = params["bn_gamma"] * lax.rsqrt(params["bn_var"] + 1e-5)       # (1,F)
    w_bn = params["w_in2mod"] * scale.reshape(-1, 1)                      # (F,M)
    b_bn = (params["b_in2mod"]
            + (params["bn_beta"] - params["bn_mean"] * scale) @ params["w_in2mod"])
    w_gf = (w_bn @ params["wih_f"]).astype(jnp.bfloat16)                  # (F,4H)
    w_gb = (w_bn @ params["wih_b"]).astype(jnp.bfloat16)
    b_gf = b_bn @ params["wih_f"] + params["b_f"]                         # (1,4H)
    b_gb = b_bn @ params["wih_b"] + params["b_b"]

    gates_f2d, gates_b2d = gate_projection(fused.reshape(S * B, F),
                                           w_gf, w_gb, b_gf, b_gb)
    gates_f = gates_f2d.reshape(S, B, 4 * H)     # rows already time-major -> free
    gates_b = gates_b2d.reshape(S, B, 4 * H)

    out_f, out_b = bilstm_fused(gates_f, gates_b, params["h0"], params["c0"],
                                params["whh_f"].astype(jnp.bfloat16),
                                params["whh_b"].astype(jnp.bfloat16), H)
    # (S,B,H) bf16 each, both in original time order; small bf16 relayout to
    # batch-major for the per-sentence attention kernel.
    lstm_bm = jnp.concatenate([out_f, out_b], axis=-1).transpose(1, 0, 2)  # (B,S,2H)

    # masked dot attention + hid2emission (+ReLU); key-pad vector, no (B,S,S) mask
    L = params["w_emis"].shape[1]
    LP = ((L + 127) // 128) * 128
    w_pad = (jnp.zeros((2 * H, LP), jnp.float32)
             .at[:, :L].set(params["w_emis"]).astype(jnp.bfloat16))
    b_pad = jnp.zeros((1, LP), jnp.float32).at[:, :L].set(params["b_emis"])
    keypad = (word_data == pad_idx).astype(jnp.float32).reshape(B, 1, S)

    emission_pad = atten_emission(lstm_bm, keypad, w_pad, b_pad)          # (B,S,LP)
    return emission_pad[:, :, :L]


# ---------------------------------------------------------------------------
if __name__ == "__main__":
    key = jax.random.PRNGKey(0)
    B, S, W = 2, 8, 8
    CHAR_V, WORD_V, POS_V, CASE_V = 30, 50, 10, 4
    C_DIM, WRD_DIM, POS_DIM, CASE_DIM = 16, 32, 8, 4
    CNN_OUT, K = 16, 3
    INPUT_DIM = WRD_DIM + CNN_OUT + POS_DIM + CASE_DIM          # 60
    MODEL_DIM, HID_DIM, NUM_LABELS = 32, 32, 8
    H = HID_DIM // 2
    PAD = 0

    ks = jax.random.split(key, 22)

    def normal(k, shape, scale=0.1):
        return (scale * jax.random.normal(k, shape)).astype(jnp.float32)

    params = dict(
        char_table=normal(ks[0], (CHAR_V, C_DIM)),
        word_table=normal(ks[1], (WORD_V, WRD_DIM)),
        pos_table=normal(ks[2], (POS_V, POS_DIM)),
        case_table=normal(ks[3], (CASE_V, CASE_DIM)),
        cnn_k=K,
        w_cnn=normal(ks[4], (K, C_DIM, CNN_OUT)),
        b_cnn=normal(ks[5], (1, CNN_OUT)),
        bn_gamma=jnp.ones((1, INPUT_DIM), jnp.float32),
        bn_beta=jnp.zeros((1, INPUT_DIM), jnp.float32),
        bn_mean=jnp.zeros((1, INPUT_DIM), jnp.float32),
        bn_var=jnp.ones((1, INPUT_DIM), jnp.float32),
        w_in2mod=normal(ks[6], (INPUT_DIM, MODEL_DIM)),
        b_in2mod=normal(ks[7], (1, MODEL_DIM)),
        wih_f=normal(ks[8], (MODEL_DIM, 4 * H)),
        whh_f=normal(ks[9], (H, 4 * H)),
        b_f=normal(ks[10], (1, 4 * H)),
        wih_b=normal(ks[11], (MODEL_DIM, 4 * H)),
        whh_b=normal(ks[12], (H, 4 * H)),
        b_b=normal(ks[13], (1, 4 * H)),
        h0=normal(ks[14], (2, B, H), 1.0),   # init_lstm_hidden uses torch.randn
        c0=normal(ks[15], (2, B, H), 1.0),
        w_emis=normal(ks[16], (HID_DIM, NUM_LABELS)),
        b_emis=normal(ks[17], (1, NUM_LABELS)),
    )

    char_data = jax.random.randint(ks[18], (B, S, W), 1, CHAR_V, dtype=jnp.int32)
    word_data = jax.random.randint(ks[19], (B, S), 1, WORD_V, dtype=jnp.int32)
    word_data = word_data.at[1, 6:].set(PAD)     # pad the tail of sentence 1
    pos_data = jax.random.randint(ks[20], (B, S), 0, POS_V, dtype=jnp.int32)
    case_data = jax.random.randint(ks[21], (B, S), 0, CASE_V, dtype=jnp.int32)

    emission = bilstm_atten_soft_forward(params, char_data, word_data,
                                         pos_data, case_data, PAD)
    emission = jax.block_until_ready(emission)
    assert emission.shape == (B, S, NUM_LABELS)
    assert bool(jnp.all(jnp.isfinite(emission)))
    print("KERNEL_OK")
</pallas_src>

<mosaic_0001>
module attributes {stable_mosaic.version = 11 : i64} {
  func.func @_char_cnn_kernel(%arg0: i32, %arg1: memref<16x8x16xbf16, #tpu.memory_space<vmem>>, %arg2: memref<3x16x128xbf16, #tpu.memory_space<vmem>>, %arg3: memref<1x128xf32, #tpu.memory_space<vmem>>, %arg4: memref<16x128xbf16, #tpu.memory_space<vmem>>) attributes {dimension_semantics = [#tpu.dimension_semantics<parallel>], iteration_bounds = array<i64: 1>, scalar_prefetch = 0 : i64, scratch_operands = 0 : i64, tpu.core_type = #tpu.core_type<tc>, window_params = [{transform_indices = @transform_0, window_bounds = array<i64: 16, 8, 16>}, {pipeline_mode = #tpu.pipeline_mode<synchronous>, transform_indices = @transform_1, window_bounds = array<i64: 3, 16, 128>}, {pipeline_mode = #tpu.pipeline_mode<synchronous>, transform_indices = @transform_2, window_bounds = array<i64: 1, 128>}, {transform_indices = @transform_3, window_bounds = array<i64: 16, 128>}]} {
    %c0 = arith.constant 0 : index
    %c0_0 = arith.constant 0 : index
    %c0_1 = arith.constant 0 : index
    %0 = vector.load %arg1[%c0, %c0_0, %c0_1] : memref<16x8x16xbf16, #tpu.memory_space<vmem>>, vector<16x8x16xbf16>
    %1 = vector.extract_strided_slice %0 {offsets = [0, 0, 0], sizes = [16, 6, 16], strides = [1, 1, 1]} : vector<16x8x16xbf16> to vector<16x6x16xbf16>
    %c0_2 = arith.constant 0 : index
    %c0_3 = arith.constant 0 : index
    %c0_4 = arith.constant 0 : index
    %2 = vector.load %arg2[%c0_2, %c0_3, %c0_4] : memref<3x16x128xbf16, #tpu.memory_space<vmem>>, vector<1x16x128xbf16>
    %3 = vector.shape_cast %2 : vector<1x16x128xbf16> to vector<16x128xbf16>
    "tpu.trace_start"() <{level = 10 : i32, message = "ntc,co->nto"}> : () -> ()
    %cst = arith.constant dense<0.000000e+00> : vector<16x6x128xf32>
    %4 = tpu.matmul %1, %3, %cst {dimension_numbers = #tpu.dot_dimension_numbers<[2], [0], [0, 1], [1], [0, 0, 0, 1, 1, 1], [], []>} : vector<16x6x16xbf16>, vector<16x128xbf16>, vector<16x6x128xf32> -> vector<16x6x128xf32>
    "tpu.trace_stop"() : () -> ()
    %5 = vector.extract_strided_slice %0 {offsets = [0, 1, 0], sizes = [16, 6, 16], strides = [1, 1, 1]} : vector<16x8x16xbf16> to vector<16x6x16xbf16>
    %c1 = arith.constant 1 : index
    %c0_5 = arith.constant 0 : index
    %c0_6 = arith.constant 0 : index
    %6 = vector.load %arg2[%c1, %c0_5, %c0_6] : memref<3x16x128xbf16, #tpu.memory_space<vmem>>, vector<1x16x128xbf16>
    %7 = vector.shape_cast %6 : vector<1x16x128xbf16> to vector<16x128xbf16>
    "tpu.trace_start"() <{level = 10 : i32, message = "ntc,co->nto"}> : () -> ()
    %cst_7 = arith.constant dense<0.000000e+00> : vector<16x6x128xf32>
    %8 = tpu.matmul %5, %7, %cst_7 {dimension_numbers = #tpu.dot_dimension_numbers<[2], [0], [0, 1], [1], [0, 0, 0, 1, 1, 1], [], []>} : vector<16x6x16xbf16>, vector<16x128xbf16>, vector<16x6x128xf32> -> vector<16x6x128xf32>
    "tpu.trace_stop"() : () -> ()
    %9 = arith.addf %4, %8 : vector<16x6x128xf32>
    %10 = vector.extract_strided_slice %0 {offsets = [0, 2, 0], sizes = [16, 6, 16], strides = [1, 1, 1]} : vector<16x8x16xbf16> to vector<16x6x16xbf16>
    %c2 = arith.constant 2 : index
    %c0_8 = arith.constant 0 : index
    %c0_9 = arith.constant 0 : index
    %11 = vector.load %arg2[%c2, %c0_8, %c0_9] : memref<3x16x128xbf16, #tpu.memory_space<vmem>>, vector<1x16x128xbf16>
    %12 = vector.shape_cast %11 : vector<1x16x128xbf16> to vector<16x128xbf16>
    "tpu.trace_start"() <{level = 10 : i32, message = "ntc,co->nto"}> : () -> ()
    %cst_10 = arith.constant dense<0.000000e+00> : vector<16x6x128xf32>
    %13 = tpu.matmul %10, %12, %cst_10 {dimension_numbers = #tpu.dot_dimension_numbers<[2], [0], [0, 1], [1], [0, 0, 0, 1, 1, 1], [], []>} : vector<16x6x16xbf16>, vector<16x128xbf16>, vector<16x6x128xf32> -> vector<16x6x128xf32>
    "tpu.trace_stop"() : () -> ()
    %14 = arith.addf %9, %13 : vector<16x6x128xf32>
    %c0_11 = arith.constant 0 : index
    %c0_12 = arith.constant 0 : index
    %15 = vector.load %arg3[%c0_11, %c0_12] : memref<1x128xf32, #tpu.memory_space<vmem>>, vector<1x128xf32>
    %16 = vector.shape_cast %15 : vector<1x128xf32> to vector<1x1x128xf32>
    %17 = vector.broadcast %16 : vector<1x1x128xf32> to vector<16x6x128xf32>
    %18 = arith.addf %14, %17 : vector<16x6x128xf32>
    %cst_13 = arith.constant 0.000000e+00 : f32
    %19 = vector.broadcast %cst_13 : f32 to vector<16x6x128xf32>
    %20 = arith.maximumf %18, %19 : vector<16x6x128xf32>
    %cst_14 = arith.constant dense<0xFF800000> : vector<16x128xf32>
    %21 = vector.multi_reduction <maximumf>, %20, %cst_14 [1] : vector<16x6x128xf32> to vector<16x128xf32>
    %22 = arith.truncf %21 : vector<16x128xf32> to vector<16x128xbf16>
    %c0_15 = arith.constant 0 : index
    %c0_16 = arith.constant 0 : index
    %23 = vector.load %arg4[%c0_15, %c0_16] : memref<16x128xbf16, #tpu.memory_space<vmem>>, vector<16x128xbf16>
    tpu.vector_store %arg4[%c0_15, %c0_16], %22 {strides = array<i32>} : memref<16x128xbf16, #tpu.memory_space<vmem>>, vector<16x128xbf16>,
    return
  }
  func.func @transform_0(%arg0: i32) -> (i32, i32, i32) {
    %c0_i32 = arith.constant 0 : i32
    %c0_i32_0 = arith.constant 0 : i32
    %c0_i32_1 = arith.constant 0 : i32
    return %arg0, %c0_i32, %c0_i32_0 : i32, i32, i32
  }
  func.func @transform_1(%arg0: i32) -> (i32, i32, i32) {
    %c0_i32 = arith.constant 0 : i32
    %c0_i32_0 = arith.constant 0 : i32
    %c0_i32_1 = arith.constant 0 : i32
    %c0_i32_2 = arith.constant 0 : i32
    return %c0_i32, %c0_i32_0, %c0_i32_1 : i32, i32, i32
  }
  func.func @transform_2(%arg0: i32) -> (i32, i32) {
    %c0_i32 = arith.constant 0 : i32
    %c0_i32_0 = arith.constant 0 : i32
    %c0_i32_1 = arith.constant 0 : i32
    return %c0_i32, %c0_i32_0 : i32, i32
  }
  func.func @transform_3(%arg0: i32) -> (i32, i32) {
    %c0_i32 = arith.constant 0 : i32
    %c0_i32_0 = arith.constant 0 : i32
    return %arg0, %c0_i32 : i32, i32
  }
}

</mosaic_0001>

<bundles_post_ra>
// kernel: tpu_custom_call.1
= control target key start
LH: loop header
LB: loop body
LE: loop exit
PB: predicated region body
PF: predicated region fallthrough
CT: control target
= control target key end

     0   :  { %8 = vsyncpa [#allocation3], 0  ;;  %s4737_s0 = inlined_call_operand.hbm [shape: bf16[16,8,16], index: 0, kind: input, shape index: {}]   ;;  %s4738_s1 = inlined_call_operand.hbm [shape: bf16[3,16,128], index: 1, kind: input, shape index: {}]   ;;  %s4739_s2 = inlined_call_operand.vmem [shape: f32[1,128], index: 2, kind: input, shape index: {}]   ;;  %s4740_s3 = inlined_call_operand.hbm [shape: bf16[16,128], index: 3, kind: output, shape index: {}]  }
   0x1   :  { %9 = vsyncpa [#allocation6], 0 }
   0x2   :  { %10 = vsyncpa [#allocation4], 0  ;;  %s3621_s12 = smov [#allocation2]   ;;  %s3549_s16 = scalar_lea.hbm %s4737_s0, 1024 }
   0x3   :  { %s16_s13 = sshll.u32 %s3621_s12, 4  ;;  %p3550_p0 = scmp.ne.s32.totalorder %s4737_s0, %s3549_s16  ;;  %s17_s13 = int_to_ptr.vmem [resolvable:$true] %s16_s13 }
   0x4   :  { %p3553_p1 = scmp.lt.u32.totalorder %s3549_s16, %s4737_s0 }
   0x6   :  { %p3555_p2 = pnand %p3553_p1, %p3550_p0 }
   0x8   :  { %3558 = shalt.err (!%p3555_p2)
}
   0x9   :  { %s3559_s21 = scalar_lea.vmem %s17_s13, 1024  ;;  %p3564_p4 = scmp.lt.s32.totalorder %s17_s13, %s17_s13 }
   0xa   :  { %p3560_p3 = scmp.ne.s32.totalorder %s17_s13, %s3559_s21  ;;  %p3565_p5 = scmp.lt.s32.totalorder %s3559_s21, %s3559_s21 }
   0xc   :  { %p3566_p6 = por %p3565_p5, %p3564_p4 }
   0xe   :  { %p3567_p7 = pnand %p3566_p6, %p3560_p3 }
  0x10   :  { %3570 = shalt.err (!%p3567_p7)
}
  0x11   :  { %s3622_s22 = smov 64   ;;  %s3623_s23 = smov 4  }
  0x12   :  { %22 = dma.hbm_to_vmem [thread:$0]  %s4737_s0, 1024, %s17_s13, [#allocation3], %s3622_s22, %s3622_s22, %s3623_s23  }
  0x13   :  { %s3624_s26 = smov [#allocation5]   ;;  %s3571_s30 = scalar_lea.hbm %s4738_s1, 384 }
  0x14   :  { %s28_s27 = sshll.u32 %s3624_s26, 4  ;;  %p3572_p8 = scmp.ne.s32.totalorder %s4738_s1, %s3571_s30  ;;  %s29_s27 = int_to_ptr.vmem [resolvable:$true] %s28_s27 }
  0x15   :  { %p3575_p9 = scmp.lt.u32.totalorder %s3571_s30, %s4738_s1 }
  0x17   :  { %p3577_p10 = pnand %p3575_p9, %p3572_p8 }
  0x19   :  { %3580 = shalt.err (!%p3577_p10)
}
  0x1a   :  { %s3581_s8 = scalar_lea.vmem %s29_s27, 384  ;;  %p3586_p12 = scmp.lt.s32.totalorder %s29_s27, %s29_s27 }
  0x1b   :  { %p3582_p11 = scmp.ne.s32.totalorder %s29_s27, %s3581_s8  ;;  %p3587_p13 = scmp.lt.s32.totalorder %s3581_s8, %s3581_s8 }
  0x1d   :  { %p3588_p0 = por %p3587_p13, %p3586_p12 }
  0x1f   :  { %p3589_p1 = pnand %p3588_p0, %p3582_p11 }
  0x21   :  { %3592 = shalt.err (!%p3589_p1)
}
  0x22   :  { %34 = dma.hbm_to_vmem [thread:$0]  %s4738_s1, 384, %s29_s27, [#allocation6], %s3622_s22, %s3622_s22, %s3623_s23  }
  0x23   :  { %3615 = dma.done.wait [#allocation3], 1024  }
  0x24   :  { %3616 = vsyncadd [#allocation3], 4294966272 }
  0x25   :  { %3617 = dma.done.wait [#allocation6], 384  }
  0x26   :  { %3618 = vsyncadd [#allocation6], 4294966912  ;;  %v92_v0 = vlaneseq  ;;  %vm465_vm0 = vsmask.f32 256  ;;  %v3625_v1 = vmov 1966171168  }
  0x27   :  { %v90_v2 = vunpack.c.l.s4 %v3625_v1  ;;  %vm466_vm1 = vsmask.f32 1284  ;;  %vm468_vm2 = vsmask.f32 2312  ;;  %vm470_vm3 = vsmask.f32 3340 }
  0x28   :  { %v3678_v3 = vshrl.u32 %v92_v0, 7  ;;  %vm467_vm4 = vmor %vm465_vm0, %vm466_vm1  ;;  %vm472_vm5 = vsmask.f32 4368  ;;  %vm474_vm7 = vsmask.f32 5396  ;;  %v3546_v6 = vld [vmem:[#allocation5 + $0x8] sm:$0xff]  }
  0x29   :  { %v91_v4 = vunpack.c.0.s8 %v90_v2  ;;  %vm469_vm6 = vmor %vm467_vm4, %vm468_vm2  ;;  %vm476_vm11 = vsmask.f32 6424  ;;  %vm478_vm12 = vsmask.f32 7452  ;;  %3525 = vmatprep.subr.bf16.mxu1 %v3546_v6  ;;  %3483 = vmatprep.subr.bf16.mxu0 %v3546_v6  ;;  %v3689_v14 = vld [vmem:[#allocation5 + $0x10] sm:$0xff]   ;;  %v3691_v15 = vld [vmem:[#allocation5] sm:$0xff]  }
  0x2a   :  { %4764 = vst [vmem:[#allocation11_spill] sm:$0xff] %v3678_v3  ;;  %vm471_vm8 = vmor %vm469_vm6, %vm470_vm3  ;;  %v3336_v7 = vld.sshfl [vmem:[#allocation2] sm:$0x33 pattern:$0x75316420]  ;;  %3526 = vmatpush3.bf16.msra.mxu1 %v3546_v6  ;;  %3484 = vmatpush3.bf16.msra.mxu0 %v3546_v6  ;;  %vm1180_vm15 = vcmask 130048  }
  0x2b   :  { %v3681_v5 = vsub.s32 %v91_v4, %v3678_v3  ;;  %vm473_vm9 = vmor %vm471_vm8, %vm472_vm5  ;;  %v3337_v8 = vld.sshfl [vmem:[#allocation2 + $0x4] sm:$0x33 pattern:$0x75316420]  ;;  %v88_v9 = vcombine.high %v3336_v7, %v3336_v7  ;;  %3511 = vmatprep.subr.bf16.mxu1 %v3689_v14  ;;  %3497 = vmatprep.subr.bf16.mxu0 %v3691_v15  ;;  %vm3098_vm0 = vcmask 1045504   ;;  %vm3291_vm1 = vcmask 1041409  }
  0x2c   :  { %vm475_vm10 = vmor %vm473_vm9, %vm474_vm7  ;;  %v3338_v11 = vld.sshfl [vmem:[#allocation2 + $0x8] sm:$0x33 pattern:$0x75316420]  ;;  %v112_v12 = vcombine.high %v3337_v8, %v3337_v8  ;;  %vm3293_vm2 = vcmask 1042434   ;;  %vm3295_vm3 = vcmask 1043459  }
  0x2d   :  { %v3684_v10 = vrot.slane %v3336_v7, %v3681_v5  ;;  %vm477_vm13 = vmor %vm475_vm10, %vm476_vm11  ;;  %v3687_v13 = vrot.slane %v3337_v8, %v3681_v5  ;;  %v3694_v16 = vrot.slane %v88_v9, %v3681_v5  ;;  %v136_v18 = vcombine.high %v3338_v11, %v3338_v11  ;;  %v3341_v37 = vld.sshfl [vmem:[#allocation2 + $0x14] sm:$0x33 pattern:$0x75316420] }
  0x2e   :  { %v3701_v19 = vrot.slane %v3338_v11, %v3681_v5  ;;  %v3704_v20 = vrot.slane %v112_v12, %v3681_v5  ;;  %vm3711_vm14 = vmor %vm477_vm13, %vm478_vm12  ;;  %v3342_v46 = vld.sshfl [vmem:[#allocation2 + $0x18] sm:$0x33 pattern:$0x75316420]  ;;  %v208_v57 = vcombine.high %v3341_v37, %v3341_v37  ;;  %v3762_v58 = vrot.slane %v3341_v37, %v3681_v5 }
  0x2f   :  { %v3698_v17 = vcombine.high %v3684_v10, %v3684_v10  ;;  %v3708_v21 = vcombine.high %v3687_v13, %v3687_v13  ;;  %v481_v23 = vshrl.u32 %v3684_v10, 16  ;;  %v506_v24 = vshrl.u32 %v3687_v13, 16  ;;  %v3343_v56 = vld.sshfl [vmem:[#allocation2 + $0x1c] sm:$0x33 pattern:$0x75316420] }
  0x30   :  { %v3721_v25 = vcombine.high %v3694_v16, %v3694_v16  ;;  %v3724_v26 = vrot.slane %v136_v18, %v3681_v5  ;;  %v3728_v27 = vcombine.high %v3701_v19, %v3701_v19  ;;  %v486_v28 = vshll.u32 %v3694_v16, 16 }
  0x31   :  { %v128_v29 = vcombine.high %v3704_v20, %v3704_v20  ;;  %v489_v30 = vshrl.u32 %v3694_v16, 16  ;;  %v494_v31 = vshll.u32 %v3698_v17, 16  ;;  %v497_v32 = vshrl.u32 %v3698_v17, 16 }
  0x32   :  { %v488_v33 = vsel %vm3711_vm14, %v481_v23, %v486_v28  ;;  %v502_v34 = vshll.u32 %v3721_v25, 16  ;;  %v511_v35 = vshll.u32 %v3704_v20, 16  ;;  %v514_v36 = vshrl.u32 %v3704_v20, 16 }
  0x33   :  { %v496_v38 = vsel %vm3711_vm14, %v489_v30, %v494_v31  ;;  %v519_v39 = vshll.u32 %v3708_v21, 16  ;;  %v522_v40 = vshrl.u32 %v3708_v21, 16  ;;  %v527_v41 = vshll.u32 %v128_v29, 16 }
  0x34   :  { %v504_v42 = vsel %vm3711_vm14, %v497_v32, %v502_v34  ;;  %v513_v43 = vsel %vm3711_vm14, %v506_v24, %v511_v35  ;;  %v531_v44 = vshrl.u32 %v3701_v19, 16  ;;  %v536_v45 = vshll.u32 %v3724_v26, 16 }
  0x35   :  { %v521_v47 = vsel %vm3711_vm14, %v514_v36, %v519_v39  ;;  %v529_v48 = vsel %vm3711_vm14, %v522_v40, %v527_v41  ;;  %v539_v49 = vshrl.u32 %v3724_v26, 16  ;;  %v544_v50 = vshll.u32 %v3728_v27, 16 }
  0x36   :  { %v538_v51 = vsel %vm3711_vm14, %v531_v44, %v536_v45  ;;  %v880_v52 = vcombine.low %v488_v33, %v496_v38  ;;  %v881_v53 = vcombine.low %v504_v42, %v513_v43  ;;  %v882_v54 = vcombine.low %v521_v47, %v529_v48  ;;  %v3339_v47 = vld.sshfl [vmem:[#allocation2 + $0xc] sm:$0x33 pattern:$0x75316420] }
  0x37   :  { %v546_v55 = vsel %vm3711_vm14, %v539_v49, %v544_v50  ;;  %v232_v59 = vcombine.high %v3342_v46, %v3342_v46  ;;  %v3768_v0 = vrot.slane %v208_v57, %v3681_v5  ;;  %v3772_v1 = vcombine.high %v3762_v58, %v3762_v58 }
  0x38   :  { %v883_v60 = vcombine.low %v538_v51, %v546_v55  ;;  %v890_v61 = vrot.slane %v880_v52, %v3681_v5  ;;  %v897_v62 = vrot.slane %v881_v53, %v3681_v5  ;;  %v904_v63 = vrot.slane %v882_v54, %v3681_v5 }
  0x39   :  { %v3775_v2 = vrot.slane %v3342_v46, %v3681_v5  ;;  %v3778_v4 = vrot.slane %v232_v59, %v3681_v5  ;;  %v256_v8 = vcombine.high %v3343_v56, %v3343_v56  ;;  %v3782_v9 = vrot.slane %v3343_v56, %v3681_v5  ;;  %v3340_v56 = vld.sshfl [vmem:[#allocation2 + $0x10] sm:$0x33 pattern:$0x75316420] }
  0x3a   :  { %v911_v6 = vrot.slane %v883_v60, %v3681_v5  ;;  %v912_v7 = vcombine.low %v890_v61, %v897_v62  ;;  %v224_v11 = vcombine.high %v3768_v0, %v3768_v0  ;;  %v614_v23 = vshrl.u32 %v3768_v0, 16 }
  0x3b   :  { %v3788_v12 = vcombine.high %v3775_v2, %v3775_v2  ;;  %v3792_v18 = vcombine.high %v3778_v4, %v3778_v4  ;;  %v3797_v29 = vrot.slane %v256_v8, %v3681_v5  ;;  %v3801_v30 = vcombine.high %v3782_v9, %v3782_v9 }
  0x3c   :  { %v913_v24 = vcombine.low %v904_v63, %v911_v6  ;;  %v920_v28 = vrot.slane %v912_v7, %v3681_v5  ;;  %v619_v31 = vshll.u32 %v3772_v1, 16  ;;  %v622_v32 = vshrl.u32 %v3772_v1, 16 }
  0x3d   :  { %4767 = vst [vmem:[#allocation12_spill] sm:$0xff] %v3792_v18  ;;  %v627_v33 = vshll.u32 %v224_v11, 16  ;;  %v631_v34 = vshrl.u32 %v3775_v2, 16  ;;  %v272_v36 = vcombine.high %v3797_v29, %v3797_v29  ;;  %v636_v37 = vshll.u32 %v3778_v4, 16 }
  0x3e   :  { %v927_v35 = vrot.slane %v913_v24, %v3681_v5  ;;  %v639_v38 = vshrl.u32 %v3778_v4, 16  ;;  %v621_v39 = vsel %vm3711_vm14, %v614_v23, %v619_v31  ;;  %v644_v41 = vshll.u32 %v3788_v12, 16 }
  0x3f   :  { %v629_v40 = vsel %vm3711_vm14, %v622_v32, %v627_v33  ;;  %v647_v42 = vshrl.u32 %v3788_v12, 16  ;;  %v638_v44 = vsel %vm3711_vm14, %v631_v34, %v636_v37  ;;  %v652_v45 = vshll.u32 %v3792_v18, 16 }
  0x40   :  { %v928_v43 = vcombine.low %v920_v28, %v927_v35  ;;  %v656_v46 = vshrl.u32 %v3782_v9, 16  ;;  %v646_v48 = vsel %vm3711_vm14, %v639_v38, %v644_v41  ;;  %v661_v49 = vshll.u32 %v3797_v29, 16 }
  0x41   :  { %v664_v50 = vshrl.u32 %v3797_v29, 16  ;;  %v669_v51 = vshll.u32 %v3801_v30, 16  ;;  %v654_v52 = vsel %vm3711_vm14, %v647_v42, %v652_v45  ;;  %v672_v53 = vshrl.u32 %v3801_v30, 16 }
  0x42   :  { %3485 = vmatprep.mubr.msk.bf16.mxu0 %vm1180_vm15, %v928_v43  ;;  %v677_v54 = vshll.u32 %v272_v36, 16  ;;  %v978_v55 = vcombine.low %v621_v39, %v629_v40  ;;  %v663_v57 = vsel %vm3711_vm14, %v656_v46, %v661_v49  ;;  %v979_v60 = vcombine.low %v638_v44, %v646_v48 }
  0x43   :  { %v671_v59 = vsel %vm3711_vm14, %v664_v50, %v669_v51  ;;  %v3836_v61 = vcombine.high %v3724_v26, %v3724_v26  ;;  %v980_v63 = vcombine.low %v654_v52, %v663_v57  ;;  %v160_v7 = vcombine.high %v3339_v47, %v3339_v47 }
  0x44   :  { %v679_v62 = vsel %vm3711_vm14, %v672_v53, %v677_v54  ;;  %v988_v6 = vrot.slane %v978_v55, %v3681_v5  ;;  %v995_v11 = vrot.slane %v979_v60, %v3681_v5  ;;  %v3843_v23 = vrot.slane %v3339_v47, %v3681_v5 }
  0x45   :  { %v981_v8 = vcombine.low %v671_v59, %v679_v62  ;;  %v184_v24 = vcombine.high %v3340_v56, %v3340_v56  ;;  %v1002_v28 = vrot.slane %v980_v63, %v3681_v5  ;;  %v3847_v31 = vrot.slane %v160_v7, %v3681_v5 }
  0x46   :  { %v3850_v32 = vrot.slane %v3340_v56, %v3681_v5  ;;  %v547_v33 = vshrl.u32 %v3728_v27, 16  ;;  %v1010_v35 = vcombine.low %v988_v6, %v995_v11  ;;  %v3856_v36 = vcombine.high %v3843_v23, %v3843_v23  ;;  %v3344_v6 = vld.sshfl [vmem:[#allocation2 + $0x20] sm:$0x33 pattern:$0x75316420] }
  0x47   :  { %v1009_v34 = vrot.slane %v981_v8, %v3681_v5  ;;  %v3859_v37 = vrot.slane %v184_v24, %v3681_v5  ;;  %v176_v38 = vcombine.high %v3847_v31, %v3847_v31  ;;  %v552_v40 = vshll.u32 %v3836_v61, 16 }
  0x48   :  { %v3865_v39 = vcombine.high %v3850_v32, %v3850_v32  ;;  %v556_v41 = vshrl.u32 %v3843_v23, 16  ;;  %v1018_v43 = vrot.slane %v1010_v35, %v3681_v5  ;;  %v561_v45 = vshll.u32 %v3847_v31, 16 }
  0x49   :  { %v1011_v42 = vcombine.low %v1002_v28, %v1009_v34  ;;  %v3872_v44 = vcombine.high %v3859_v37, %v3859_v37  ;;  %v554_v46 = vsel %vm3711_vm14, %v547_v33, %v552_v40  ;;  %v564_v47 = vshrl.u32 %v3847_v31, 16 }
  0x4a   :  { %v569_v48 = vshll.u32 %v3856_v36, 16  ;;  %v572_v49 = vshrl.u32 %v3856_v36, 16  ;;  %v563_v51 = vsel %vm3711_vm14, %v556_v41, %v561_v45  ;;  %v577_v52 = vshll.u32 %v176_v38, 16 }
  0x4b   :  { %v1025_v50 = vrot.slane %v1011_v42, %v3681_v5  ;;  %v581_v53 = vshrl.u32 %v3850_v32, 16  ;;  %v586_v55 = vshll.u32 %v3859_v37, 16  ;;  %v589_v56 = vshrl.u32 %v3859_v37, 16 }
  0x4c   :  { %v571_v54 = vsel %vm3711_vm14, %v564_v47, %v569_v48  ;;  %v594_v57 = vshll.u32 %v3865_v39, 16  ;;  %v579_v60 = vsel %vm3711_vm14, %v572_v49, %v577_v52  ;;  %v597_v62 = vshrl.u32 %v3865_v39, 16  ;;  %v3345_v38 = vld.sshfl [vmem:[#allocation2 + $0x24] sm:$0x33 pattern:$0x75316420] }
  0x4d   :  { %v1026_v59 = vcombine.low %v1018_v43, %v1025_v50  ;;  %v602_v63 = vshll.u32 %v3872_v44, 16  ;;  %v588_v7 = vsel %vm3711_vm14, %v581_v53, %v586_v55  ;;  %v606_v11 = vshrl.u32 %v3762_v58, 16  ;;  %v3346_v43 = vld.sshfl [vmem:[#allocation2 + $0x28] sm:$0x33 pattern:$0x75316420] }
  0x4e   :  { %v596_v8 = vsel %vm3711_vm14, %v589_v56, %v594_v57  ;;  %v611_v24 = vshll.u32 %v3768_v0, 16  ;;  %v929_v33 = vcombine.low %v554_v46, %v563_v51  ;;  %v930_v34 = vcombine.low %v571_v54, %v579_v60  ;;  %v3349_v41 = vld.sshfl [vmem:[#allocation2 + $0x34] sm:$0x33 pattern:$0x75316420] }
  0x4f   :  { %3489 = vmatprep.mubr.msk.bf16.mxu1 %vm1180_vm15, %v1026_v59  ;;  %v604_v28 = vsel %vm3711_vm14, %v597_v62, %v602_v63  ;;  %v931_v35 = vcombine.low %v588_v7, %v596_v8  ;;  %v280_v45 = vcombine.high %v3344_v6, %v3344_v6  ;;  %v3912_v50 = vrot.slane %v3344_v6, %v3681_v5 }
  0x50   :  { %v613_v40 = vsel %vm3711_vm14, %v606_v11, %v611_v24  ;;  %v939_v48 = vrot.slane %v929_v33, %v3681_v5  ;;  %v946_v49 = vrot.slane %v930_v34, %v3681_v5  ;;  %v304_v52 = vcombine.high %v3345_v38, %v3345_v38 }
  0x51   :  { %v932_v47 = vcombine.low %v604_v28, %v613_v40  ;;  %v953_v46 = vrot.slane %v931_v35, %v3681_v5  ;;  %v3915_v51 = vrot.slane %v280_v45, %v3681_v5  ;;  %v3918_v53 = vrot.slane %v3345_v38, %v3681_v5 }
  0x52   :  { %v961_v55 = vcombine.low %v939_v48, %v946_v49  ;;  %v328_v56 = vcombine.high %v3346_v43, %v3346_v43  ;;  %v3922_v57 = vrot.slane %v3346_v43, %v3681_v5  ;;  %v3926_v59 = vcombine.high %v3912_v50, %v3912_v50 }
  0x53   :  { %v960_v54 = vrot.slane %v932_v47, %v3681_v5  ;;  %v3930_v60 = vcombine.high %v3915_v51, %v3915_v51  ;;  %v3933_v62 = vrot.slane %v304_v52, %v3681_v5  ;;  %v3937_v63 = vcombine.high %v3918_v53, %v3918_v53 }
  0x54   :  { %v969_v7 = vrot.slane %v961_v55, %v3681_v5  ;;  %v3941_v8 = vrot.slane %v328_v56, %v3681_v5  ;;  %v3945_v11 = vcombine.high %v3922_v57, %v3922_v57  ;;  %v681_v28 = vshrl.u32 %v3912_v50, 16  ;;  %v3347_v56 = vld.sshfl [vmem:[#allocation2 + $0x2c] sm:$0x33 pattern:$0x75316420] }
  0x55   :  { %4768 = vst [vmem:[#allocation13_spill] sm:$0xff] %v3930_v60  ;;  %v962_v6 = vcombine.low %v953_v46, %v960_v54  ;;  %v320_v24 = vcombine.high %v3933_v62, %v3933_v62  ;;  %v686_v33 = vshll.u32 %v3915_v51, 16  ;;  %v689_v34 = vshrl.u32 %v3915_v51, 16 }
  0x56   :  { %4769 = vst [vmem:[#allocation14_spill] sm:$0xff] %v3945_v11  ;;  %v694_v38 = vshll.u32 %v3926_v59, 16  ;;  %v697_v40 = vshrl.u32 %v3926_v59, 16  ;;  %v702_v43 = vshll.u32 %v3930_v60, 16  ;;  %v706_v47 = vshrl.u32 %v3918_v53, 16 }
  0x57   :  { %v976_v35 = vrot.slane %v962_v6, %v3681_v5  ;;  %v688_v45 = vsel %vm3711_vm14, %v681_v28, %v686_v33  ;;  %v711_v48 = vshll.u32 %v3933_v62, 16  ;;  %v714_v49 = vshrl.u32 %v3933_v62, 16 }
  0x58   :  { %v696_v52 = vsel %vm3711_vm14, %v689_v34, %v694_v38  ;;  %v704_v54 = vsel %vm3711_vm14, %v697_v40, %v702_v43  ;;  %v719_v55 = vshll.u32 %v3937_v63, 16  ;;  %v722_v28 = vshrl.u32 %v3937_v63, 16 }
  0x59   :  { %v977_v46 = vcombine.low %v969_v7, %v976_v35  ;;  %v713_v6 = vsel %vm3711_vm14, %v706_v47, %v711_v48  ;;  %v727_v33 = vshll.u32 %v320_v24, 16  ;;  %v731_v42 = vshrl.u32 %v3922_v57, 16  ;;  %v3348_v24 = vld.sshfl [vmem:[#allocation2 + $0x30] sm:$0x33 pattern:$0x75316420] }
  0x5a   :  { %v721_v7 = vsel %vm3711_vm14, %v714_v49, %v719_v55  ;;  %v736_v34 = vshll.u32 %v3941_v8, 16  ;;  %v739_v35 = vshrl.u32 %v3941_v8, 16  ;;  %v744_v38 = vshll.u32 %v3945_v11, 16 }
  0x5b   :  { %3486 = vmatmul.mubr.msk.bf16.vlgmr.msra.gmra.mrb[0].mxu0 %vm1180_vm15, %v977_v46  ;;  %v729_v40 = vsel %vm3711_vm14, %v722_v28, %v727_v33  ;;  %v1027_v43 = vcombine.low %v688_v45, %v696_v52  ;;  %v1028_v47 = vcombine.low %v704_v54, %v713_v6  ;;  %v3981_v48 = vcombine.high %v3941_v8, %v3941_v8 }
  0x5c   :  { %3498 = vmatpush3.bf16.msra.mxu0 %v3691_v15  ;;  %v738_v49 = vsel %vm3711_vm14, %v731_v42, %v736_v34  ;;  %v746_v46 = vsel %vm3711_vm14, %v739_v35, %v744_v38  ;;  %v1029_v55 = vcombine.low %v721_v7, %v729_v40  ;;  %v352_v3 = vcombine.high %v3347_v56, %v3347_v56 }
  0x5d   :  { %4770 = vst [vmem:[#allocation15_spill] sm:$0xff] %v3981_v48  ;;  %v1030_v60 = vcombine.low %v738_v49, %v746_v46  ;;  %v1037_v45 = vrot.slane %v1027_v43, %v3681_v5  ;;  %v1044_v52 = vrot.slane %v1028_v47, %v3681_v5  ;;  %v3990_v15 = vrot.slane %v3347_v56, %v3681_v5 }
  0x5e   :  { %v1051_v54 = vrot.slane %v1029_v55, %v3681_v5  ;;  %v3994_v6 = vrot.slane %v352_v3, %v3681_v5  ;;  %v376_v42 = vcombine.high %v3348_v24, %v3348_v24  ;;  %v3997_v28 = vrot.slane %v3348_v24, %v3681_v5 }
  0x5f   :  { %4771 = vst [vmem:[#allocation16_spill] sm:$0xff] %v3990_v15  ;;  %v1058_v33 = vrot.slane %v1030_v60, %v3681_v5  ;;  %v1059_v7 = vcombine.low %v1037_v45, %v1044_v52  ;;  %v4002_v34 = vcombine.high %v3990_v15, %v3990_v15  ;;  %v400_v35 = vcombine.high %v3349_v41, %v3349_v41 }
  0x60   :  { %4772 = vst [vmem:[#allocation17_spill] sm:$0xff] %v3994_v6  ;;  %v368_v56 = vcombine.high %v3994_v6, %v3994_v6  ;;  %v4007_v38 = vrot.slane %v376_v42, %v3681_v5  ;;  %v4011_v3 = vcombine.high %v3997_v28, %v3997_v28  ;;  %v4014_v40 = vrot.slane %v3349_v41, %v3681_v5 }
  0x61   :  { %4773 = vst [vmem:[#allocation18_spill] sm:$0xff] %v4002_v34  ;;  %v1060_v60 = vcombine.low %v1051_v54, %v1058_v33  ;;  %v1067_v43 = vrot.slane %v1059_v7, %v3681_v5  ;;  %v4018_v47 = vrot.slane %v400_v35, %v3681_v5  ;;  %v747_v24 = vshrl.u32 %v3945_v11, 16 }
  0x62   :  { %4774 = vst [vmem:[#allocation19_spill] sm:$0xff] %v4011_v3  ;;  %v4023_v49 = vcombine.high %v4007_v38, %v4007_v38  ;;  %v752_v46 = vshll.u32 %v3981_v48, 16  ;;  %v756_v55 = vshrl.u32 %v3990_v15, 16  ;;  %v761_v45 = vshll.u32 %v3994_v6, 16 }
  0x63   :  { %4775 = vst [vmem:[#allocation20_spill] sm:$0xff] %v4018_v47  ;;  %v1074_v41 = vrot.slane %v1060_v60, %v3681_v5  ;;  %v764_v52 = vshrl.u32 %v3994_v6, 16  ;;  %v769_v54 = vshll.u32 %v4002_v34, 16  ;;  %v772_v42 = vshrl.u32 %v4002_v34, 16 }
  0x64   :  { %4776 = vst [vmem:[#allocation21_spill] sm:$0xff] %v4023_v49  ;;  %v754_v33 = vsel %vm3711_vm14, %v747_v24, %v752_v46  ;;  %v763_v7 = vsel %vm3711_vm14, %v756_v55, %v761_v45  ;;  %v777_v35 = vshll.u32 %v368_v56, 16  ;;  %v781_v48 = vshrl.u32 %v3997_v28, 16 }
  0x65   :  { %v1075_v15 = vcombine.low %v1067_v43, %v1074_v41  ;;  %v771_v11 = vsel %vm3711_vm14, %v764_v52, %v769_v54  ;;  %v786_v60 = vshll.u32 %v4007_v38, 16  ;;  %v789_v6 = vshrl.u32 %v4007_v38, 16  ;;  %v3350_v41 = vld.sshfl [vmem:[#allocation2 + $0x38] sm:$0x33 pattern:$0x75316420] }
  0x66   :  { %v779_v34 = vsel %vm3711_vm14, %v772_v42, %v777_v35  ;;  %v794_v18 = vshll.u32 %v4011_v3, 16  ;;  %v797_v24 = vshrl.u32 %v4011_v3, 16  ;;  %v802_v46 = vshll.u32 %v4023_v49, 16 }
  0x67   :  { %3490 = vmatmul.mubr.msk.bf16.vlgmr.msra.gmra.mrb[0].mxu1 %vm1180_vm15, %v1075_v15  ;;  %v788_v56 = vsel %vm3711_vm14, %v781_v48, %v786_v60  ;;  %v806_v43 = vshrl.u32 %v4014_v40, 16  ;;  %v811_v55 = vshll.u32 %v4018_v47, 16  ;;  %v1076_v45 = vcombine.low %v754_v33, %v763_v7  ;;  %v3351_v35 = vld.sshfl [vmem:[#allocation2 + $0x3c] sm:$0x33 pattern:$0x75316420] }
  0x68   :  { %3512 = vmatpush3.bf16.msra.mxu1 %v3689_v14  ;;  %v796_v52 = vsel %vm3711_vm14, %v789_v6, %v794_v18  ;;  %v804_v54 = vsel %vm3711_vm14, %v797_v24, %v802_v46  ;;  %v1077_v42 = vcombine.low %v771_v11, %v779_v34  ;;  %v4058_v15 = vcombine.high %v4014_v40, %v4014_v40 }
  0x69   :  { %v813_v48 = vsel %vm3711_vm14, %v806_v43, %v811_v55  ;;  %v1078_v60 = vcombine.low %v788_v56, %v796_v52  ;;  %v1086_v33 = vrot.slane %v1076_v45, %v3681_v5  ;;  %v416_v14 = vcombine.high %v4018_v47, %v4018_v47 }
  0x6a   :  { %4777 = vst [vmem:[#allocation22_spill] sm:$0xff] %v4058_v15  ;;  %v1079_v7 = vcombine.low %v804_v54, %v813_v48  ;;  %v1093_v18 = vrot.slane %v1077_v42, %v3681_v5  ;;  %v424_v6 = vcombine.high %v3350_v41, %v3350_v41  ;;  %v4067_v11 = vrot.slane %v3350_v41, %v3681_v5 }
  0x6b   :  { %v1100_v34 = vrot.slane %v1078_v60, %v3681_v5  ;;  %v448_v24 = vcombine.high %v3351_v35, %v3351_v35  ;;  %v4071_v46 = vrot.slane %v3351_v35, %v3681_v5  ;;  %v814_v56 = vshrl.u32 %v4018_v47, 16 }
  0x6c   :  { %4778 = vst [vmem:[#allocation23_spill] sm:$0xff] %v4067_v11  ;;  %v1107_v43 = vrot.slane %v1079_v7, %v3681_v5  ;;  %v1108_v55 = vcombine.low %v1086_v33, %v1093_v18  ;;  %v4076_v45 = vrot.slane %v424_v6, %v3681_v5  ;;  %v4080_v52 = vcombine.high %v4067_v11, %v4067_v11 }
  0x6d   :  { %v4083_v41 = vrot.slane %v448_v24, %v3681_v5  ;;  %v4087_v54 = vcombine.high %v4071_v46, %v4071_v46  ;;  %v819_v42 = vshll.u32 %v4058_v15, 16  ;;  %v822_v35 = vshrl.u32 %v4058_v15, 16 }
  0x6e   :  { %4779 = vst [vmem:[#allocation24_spill] sm:$0xff] %v4076_v45  ;;  %v1109_v48 = vcombine.low %v1100_v34, %v1107_v43  ;;  %v1116_v60 = vrot.slane %v1108_v55, %v3681_v5  ;;  %v4094_v33 = vcombine.high %v4076_v45, %v4076_v45  ;;  %v827_v7 = vshll.u32 %v416_v14, 16 }
  0x6f   :  { %4780 = vst [vmem:[#allocation25_spill] sm:$0xff] %v4083_v41  ;;  %v464_v18 = vcombine.high %v4083_v41, %v4083_v41  ;;  %v821_v6 = vsel %vm3711_vm14, %v814_v56, %v819_v42  ;;  %v831_v24 = vshrl.u32 %v4067_v11, 16  ;;  %v836_v49 = vshll.u32 %v4076_v45, 16 }
  0x70   :  { %4781 = vst [vmem:[#allocation26_spill] sm:$0xff] %v4094_v33  ;;  %v1123_v47 = vrot.slane %v1109_v48, %v3681_v5  ;;  %v829_v34 = vsel %vm3711_vm14, %v822_v35, %v827_v7  ;;  %v839_v43 = vshrl.u32 %v4076_v45, 16  ;;  %v844_v55 = vshll.u32 %v4080_v52, 16 }
  0x71   :  { %v838_v14 = vsel %vm3711_vm14, %v831_v24, %v836_v49  ;;  %v847_v15 = vshrl.u32 %v4080_v52, 16  ;;  %v852_v56 = vshll.u32 %v4094_v33, 16  ;;  %v856_v42 = vshrl.u32 %v4071_v46, 16 }
  0x72   :  { %v1124_v11 = vcombine.low %v1116_v60, %v1123_v47  ;;  %v846_v48 = vsel %vm3711_vm14, %v839_v43, %v844_v55  ;;  %v861_v3 = vshll.u32 %v4083_v41, 16  ;;  %v864_v35 = vshrl.u32 %v4083_v41, 16 }
  0x73   :  { %v854_v7 = vsel %vm3711_vm14, %v847_v15, %v852_v56  ;;  %v869_v45 = vshll.u32 %v4087_v54, 16  ;;  %v872_v49 = vshrl.u32 %v4087_v54, 16  ;;  %v877_v24 = vshll.u32 %v464_v18, 16 }
  0x74   :  { %3493 = vmatprep.mubr.msk.bf16.mxu1 %vm1180_vm15, %v1124_v11  ;;  %v863_v47 = vsel %vm3711_vm14, %v856_v42, %v861_v3  ;;  %v1125_v60 = vcombine.low %v821_v6, %v829_v34  ;;  %v1126_v33 = vcombine.low %v838_v14, %v846_v48  ;;  %v1280_v43 = vcombine.low %v3684_v10, %v3694_v16 }
  0x75   :  { %v871_v55 = vsel %vm3711_vm14, %v864_v35, %v869_v45  ;;  %v879_v15 = vsel %vm3711_vm14, %v872_v49, %v877_v24  ;;  %v1127_v56 = vcombine.low %v854_v7, %v863_v47  ;;  %v1281_v18 = vcombine.low %v3698_v17, %v3687_v13 }
  0x76   :  { %v1128_v41 = vcombine.low %v871_v55, %v879_v15  ;;  %v1135_v11 = vrot.slane %v1125_v60, %v3681_v5  ;;  %v1142_v3 = vrot.slane %v1126_v33, %v3681_v5  ;;  %v1282_v6 = vcombine.low %v3704_v20, %v3708_v21 }
  0x77   :  { %v1149_v10 = vrot.slane %v1127_v56, %v3681_v5  ;;  %v1283_v45 = vcombine.low %v3701_v19, %v3724_v26  ;;  %v1290_v22 = vrot.slane %v1280_v43, %v3681_v5  ;;  %v1297_v34 = vrot.slane %v1281_v18, %v3681_v5 }
  0x78   :  { %v1156_v14 = vrot.slane %v1128_v41, %v3681_v5  ;;  %v1157_v42 = vcombine.low %v1135_v11, %v1142_v3  ;;  %v1304_v48 = vrot.slane %v1282_v6, %v3681_v5  ;;  %v1329_v33 = vcombine.low %v3728_v27, %v3843_v23 }
  0x79   :  { %v1311_v35 = vrot.slane %v1283_v45, %v3681_v5  ;;  %v1312_v21 = vcombine.low %v1290_v22, %v1297_v34  ;;  %v1330_v7 = vcombine.low %v3847_v31, %v3856_v36  ;;  %v1331_v19 = vcombine.low %v3850_v32, %v3859_v37 }
  0x7a   :  { %v1158_v49 = vcombine.low %v1149_v10, %v1156_v14  ;;  %v1165_v24 = vrot.slane %v1157_v42, %v3681_v5  ;;  %v1332_v41 = vcombine.low %v3865_v39, %v3762_v58  ;;  %v1339_v47 = vrot.slane %v1329_v33, %v3681_v5 }
  0x7b   :  { %v1313_v60 = vcombine.low %v1304_v48, %v1311_v35  ;;  %v1320_v43 = vrot.slane %v1312_v21, %v3681_v5  ;;  %v1346_v55 = vrot.slane %v1330_v7, %v3681_v5  ;;  %v1353_v15 = vrot.slane %v1331_v19, %v3681_v5 }
  0x7c   :  { %v1172_v36 = vrot.slane %v1158_v49, %v3681_v5  ;;  %v1360_v56 = vrot.slane %v1332_v41, %v3681_v5  ;;  %v1946_v32 = vcombine.low %v3694_v16, %v3698_v17  ;;  %v1947_v18 = vcombine.low %v3721_v25, %v3704_v20 }
  0x7d   :  { %v1327_v11 = vrot.slane %v1313_v60, %v3681_v5  ;;  %v1361_v3 = vcombine.low %v1339_v47, %v1346_v55  ;;  %v3414_v6 = vcombine.high %v3687_v13, %v3704_v20  ;;  %v1949_v10 = vcombine.low %v3724_v26, %v3728_v27 }
  0x7e   :  { %v1173_v45 = vcombine.low %v1165_v24, %v1172_v36  ;;  %v1362_v22 = vcombine.low %v1353_v15, %v1360_v56  ;;  %v1956_v34 = vrot.slane %v1946_v32, %v3681_v5  ;;  %v1963_v14 = vrot.slane %v1947_v18, %v3681_v5 }
  0x7f   :  { %v1328_v42 = vcombine.low %v1320_v43, %v1327_v11  ;;  %v1369_v16 = vrot.slane %v1361_v3, %v3681_v5  ;;  %v1970_v17 = vrot.slane %v3414_v6, %v3681_v5  ;;  %v1977_v25 = vrot.slane %v1949_v10, %v3681_v5 }
  0x80   :  { %3494 = vmatmul.mubr.msk.bf16.gmra.mrb[4].mxu1 %vm1180_vm15, %v1173_v45  ;;  %v1376_v13 = vrot.slane %v1362_v22, %v3681_v5  ;;  %v1978_v20 = vcombine.low %v1956_v34, %v1963_v14  ;;  %v3415_v26 = vcombine.high %v3843_v23, %v3847_v31  ;;  %v1997_v27 = vcombine.low %v3859_v37, %v3865_v39 }
  0x81   :  { %3499 = vmatprep.mubr.msk.bf16.mxu0 %vm1180_vm15, %v1328_v42  ;;  %v1979_v48 = vcombine.low %v1970_v17, %v1977_v25  ;;  %v4782_v33 = vcombine.low %v3836_v61, %v3847_v31  ;;  %v4783_v21 = vcombine.low %v3872_v44, %v3768_v0  ;;  %v1378_v19 = vcombine.low %v3768_v0, %v3772_v1 }
  0x82   :  { %v1377_v23 = vcombine.low %v1369_v16, %v1376_v13  ;;  %v1986_v49 = vrot.slane %v1978_v20, %v3681_v5  ;;  %v2012_v37 = vrot.slane %v3415_v26, %v3681_v5  ;;  %v2019_v39 = vrot.slane %v1997_v27, %v3681_v5  ;;  %v4784_v16 = vld [vmem:[#allocation12_spill] sm:$0xff] }
  0x83   :  { %v2005_v35 = vrot.slane %v4782_v33, %v3681_v5  ;;  %v2026_v7 = vrot.slane %v4783_v21, %v3681_v5  ;;  %v1993_v24 = vrot.slane %v1979_v48, %v3681_v5  ;;  %v1379_v61 = vcombine.low %v3775_v2, %v3778_v4  ;;  %v4785_v48 = vld [vmem:[#allocation13_spill] sm:$0xff]  ;;  %v4786_v21 = vld [vmem:[#allocation14_spill] sm:$0xff] }
  0x84   :  { %v1380_v31 = vcombine.low %v3788_v12, %v3782_v9  ;;  %v1381_v44 = vcombine.low %v3797_v29, %v3801_v30  ;;  %3500 = vmatmul.mubr.msk.bf16.vlgmr.msra.gmra.mrb[0].mxu0 %vm1180_vm15, %v1377_v23  ;;  %v1388_v47 = vrot.slane %v1378_v19, %v3681_v5  ;;  %v1427_v60 = vcombine.low %v3912_v50, %v3915_v51  ;;  %v4787_v23 = vld [vmem:[#allocation16_spill] sm:$0xff] }
  0x85   :  { %v2027_v1 = vcombine.low %v2005_v35, %v2012_v37  ;;  %v2028_v41 = vcombine.low %v2019_v39, %v2026_v7  ;;  %v1994_v43 = vcombine.low %v1986_v49, %v1993_v24  ;;  %v1395_v55 = vrot.slane %v1379_v61, %v3681_v5 }
  0x86   :  { %v1402_v2 = vrot.slane %v1380_v31, %v3681_v5  ;;  %v1409_v15 = vrot.slane %v1381_v44, %v3681_v5  ;;  %v1428_v56 = vcombine.low %v3926_v59, %v3918_v53  ;;  %v1429_v32 = vcombine.low %v3933_v62, %v3937_v63  ;;  %v4788_v31 = vld [vmem:[#allocation18_spill] sm:$0xff] }
  0x87   :  { %v2035_v36 = vrot.slane %v2027_v1, %v3681_v5  ;;  %v2042_v30 = vrot.slane %v2028_v41, %v3681_v5  ;;  %3513 = vmatprep.mubr.msk.bf16.mxu1 %vm1180_vm15, %v1994_v43  ;;  %v1410_v50 = vcombine.low %v1388_v47, %v1395_v55  ;;  %v1430_v11 = vcombine.low %v3922_v57, %v3941_v8  ;;  %v4790_v47 = vld [vmem:[#allocation19_spill] sm:$0xff]  ;;  %v4791_v55 = vld [vmem:[#allocation22_spill] sm:$0xff] }
  0x88   :  { %v1411_v18 = vcombine.low %v1402_v2, %v1409_v15  ;;  %v1437_v3 = vrot.slane %v1427_v60, %v3681_v5  ;;  %v1444_v10 = vrot.slane %v1428_v56, %v3681_v5  ;;  %v1451_v45 = vrot.slane %v1429_v32, %v3681_v5  ;;  %v4792_v2 = vld [vmem:[#allocation20_spill] sm:$0xff] }
  0x89   :  { %v2043_v6 = vcombine.low %v2035_v36, %v2042_v30  ;;  %v3416_v22 = vcombine.high %v3762_v58, %v3768_v0  ;;  %v1418_v34 = vrot.slane %v1410_v50, %v3681_v5  ;;  %v1458_v14 = vrot.slane %v1430_v11, %v3681_v5  ;;  %v4794_v11 = vld [vmem:[#allocation23_spill] sm:$0xff] }
  0x8a   :  { %v1425_v63 = vrot.slane %v1411_v18, %v3681_v5  ;;  %v2045_v42 = vcombine.low %v3778_v4, %v3788_v12  ;;  %v1459_v57 = vcombine.low %v1437_v3, %v1444_v10  ;;  %v2046_v17 = vcombine.low %v4784_v16, %v3797_v29  ;;  %v4793_v18 = vld [vmem:[#allocation24_spill] sm:$0xff] }
  0x8b   :  { %3514 = vmatmul.mubr.msk.bf16.vlgmr.msra.gmra.mrb[8].mxu1 %vm1180_vm15, %v2043_v6  ;;  %v3417_v25 = vcombine.high %v3782_v9, %v3797_v29  ;;  %v2054_v58 = vrot.slane %v3416_v22, %v3681_v5  ;;  %v1460_v13 = vcombine.low %v1451_v45, %v1458_v14  ;;  %v2093_v26 = vcombine.low %v3915_v51, %v3926_v59  ;;  %v4795_v45 = vld [vmem:[#allocation25_spill] sm:$0xff] }
  0x8c   :  { %v1426_v0 = vcombine.low %v1418_v34, %v1425_v63  ;;  %v2061_v20 = vrot.slane %v2045_v42, %v3681_v5  ;;  %v1467_v4 = vrot.slane %v1459_v57, %v3681_v5  ;;  %v2068_v12 = vrot.slane %v2046_v17, %v3681_v5  ;;  %v4796_v63 = vld [vmem:[#allocation15_spill] sm:$0xff] }
  0x8d   :  { %v2075_v27 = vrot.slane %v3417_v25, %v3681_v5  ;;  %v2094_v33 = vcombine.low %v4785_v48, %v3933_v62  ;;  %v1474_v9 = vrot.slane %v1460_v13, %v3681_v5  ;;  %v3418_v35 = vcombine.high %v3918_v53, %v3933_v62 }
  0x8e   :  { %3503 = vmatprep.mubr.msk.bf16.mxu0 %vm1180_vm15, %v1426_v0  ;;  %v2076_v29 = vcombine.low %v2054_v58, %v2061_v20  ;;  %v2096_v51 = vcombine.low %v3941_v8, %v4786_v21  ;;  %v2103_v7 = vrot.slane %v2093_v26, %v3681_v5  ;;  %v1476_v49 = vcombine.low %v4786_v21, %v4787_v23  ;;  %v4789_v8 = vld [vmem:[#allocation17_spill] sm:$0xff] }
  0x8f   :  { %v2077_v59 = vcombine.low %v2068_v12, %v2075_v27  ;;  %v2110_v19 = vrot.slane %v2094_v33, %v3681_v5  ;;  %v1475_v37 = vcombine.low %v1467_v4, %v1474_v9  ;;  %v2117_v24 = vrot.slane %v3418_v35, %v3681_v5  ;;  %v4797_v26 = vld [vmem:[#allocation21_spill] sm:$0xff] }
  0x90   :  { %v2084_v39 = vrot.slane %v2076_v29, %v3681_v5  ;;  %v2124_v61 = vrot.slane %v2096_v51, %v3681_v5  ;;  %v1477_v44 = vcombine.low %v4789_v8, %v4788_v31  ;;  %v1478_v1 = vcombine.low %v3997_v28, %v4007_v38 }
  0x91   :  { %v2091_v53 = vrot.slane %v2077_v59, %v3681_v5  ;;  %v2125_v62 = vcombine.low %v2103_v7, %v2110_v19  ;;  %3504 = vmatmul.mubr.msk.bf16.gmra.mrb[4].mxu0 %vm1180_vm15, %v1475_v37  ;;  %v1479_v60 = vcombine.low %v4790_v47, %v4014_v40  ;;  %v1486_v43 = vrot.slane %v1476_v49, %v3681_v5  ;;  %v4798_v7 = vld [vmem:[#allocation26_spill] sm:$0xff] }
  0x92   :  { %v2126_v41 = vcombine.low %v2117_v24, %v2124_v61  ;;  %v1525_v15 = vcombine.low %v4792_v2, %v4791_v55  ;;  %v1493_v56 = vrot.slane %v1477_v44, %v3681_v5  ;;  %v1500_v32 = vrot.slane %v1478_v1, %v3681_v5 }
  0x93   :  { %v2092_v36 = vcombine.low %v2084_v39, %v2091_v53  ;;  %v2133_v30 = vrot.slane %v2125_v62, %v3681_v5  ;;  %v1507_v50 = vrot.slane %v1479_v60, %v3681_v5  ;;  %v1526_v3 = vcombine.low %v4794_v11, %v4793_v18 }
  0x94   :  { %v2140_v28 = vrot.slane %v2126_v41, %v3681_v5  ;;  %v1527_v6 = vcombine.low %v4080_v52, %v4071_v46  ;;  %v1508_v10 = vcombine.low %v1486_v43, %v1493_v56  ;;  %v1528_v22 = vcombine.low %v4795_v45, %v4087_v54  ;;  %v4799_v56 = vld [vmem:[#allocation11_spill] sm:$0xff] }
  0x95   :  { %3517 = vmatprep.mubr.msk.bf16.mxu1 %vm1180_vm15, %v2092_v36  ;;  %v1535_v34 = vrot.slane %v1525_v15, %v3681_v5  ;;  %v2142_v14 = vcombine.low %v4796_v63, %v4789_v8  ;;  %v1509_v57 = vcombine.low %v1500_v32, %v1507_v50  ;;  %v1542_v16 = vrot.slane %v1526_v3, %v3681_v5 }
  0x96   :  { %v2141_v42 = vcombine.low %v2133_v30, %v2140_v28  ;;  %v1549_v17 = vrot.slane %v1527_v6, %v3681_v5  ;;  %v1516_v25 = vrot.slane %v1508_v10, %v3681_v5  ;;  %v1556_v58 = vrot.slane %v1528_v22, %v3681_v5  ;;  %v3429_v28 = vld [vmem:[%s4739_s2] ss:$0 sm:$0xff]  ;;  %s3627_s2 = smov [#allocation7]  }
  0x97   :  { %v3419_v0 = vcombine.high %v4787_v23, %v4789_v8  ;;  %v2144_v54 = vcombine.low %v4007_v38, %v4790_v47  ;;  %v1523_v13 = vrot.slane %v1509_v57, %v3681_v5  ;;  %v1557_v20 = vcombine.low %v1535_v34, %v1542_v16  ;;  %s3323_s11 = sshll.u32 %s3627_s2, 4  ;;  %s3324_s11 = int_to_ptr.vmem [resolvable:$true] %s3323_s11 }
  0x98   :  { %3518 = vmatmul.mubr.msk.bf16.gmra.mrb[12].mxu1 %vm1180_vm15, %v2141_v42  ;;  %v2145_v4 = vcombine.low %v4797_v26, %v4792_v2  ;;  %v2152_v12 = vrot.slane %v2142_v14, %v3681_v5  ;;  %v1558_v27 = vcombine.low %v1549_v17, %v1556_v58  ;;  %v3420_v9 = vcombine.high %v4014_v40, %v4792_v2  ;;  %s3593_s12 = scalar_lea.vmem %s3324_s11, 128  ;;  %p3598_p3 = scmp.lt.s32.totalorder %s3324_s11, %s3324_s11 }
  0x99   :  { %v2159_v48 = vrot.slane %v3419_v0, %v3681_v5  ;;  %v2166_v33 = vrot.slane %v2144_v54, %v3681_v5  ;;  %v1524_v29 = vcombine.low %v1516_v25, %v1523_v13  ;;  %v1565_v38 = vrot.slane %v1557_v20, %v3681_v5  ;;  %p3594_p2 = scmp.ne.s32.totalorder %s3324_s11, %s3593_s12  ;;  %p3599_p4 = scmp.lt.s32.totalorder %s3593_s12, %s3593_s12 }
  0x9a   :  { %v2173_v35 = vrot.slane %v2145_v4, %v3681_v5  ;;  %v2192_v21 = vcombine.low %v4793_v18, %v4080_v52  ;;  %v1572_v51 = vrot.slane %v1558_v27, %v3681_v5  ;;  %v2193_v19 = vcombine.low %v4798_v7, %v4795_v45 }
  0x9b   :  { %v2174_v59 = vcombine.low %v2152_v12, %v2159_v48  ;;  %v3421_v23 = vcombine.high %v4071_v46, %v4795_v45  ;;  %3507 = vmatprep.mubr.msk.bf16.mxu0 %vm1180_vm15, %v1524_v29  ;;  %v2201_v49 = vrot.slane %v3420_v9, %v3681_v5  ;;  %v3626_v55 = vmov 1983009808   ;;  %p3600_p5 = por %p3599_p4, %p3598_p3 }
  0x9c   :  { %v2175_v40 = vcombine.low %v2166_v33, %v2173_v35  ;;  %v2208_v37 = vrot.slane %v2192_v21, %v3681_v5  ;;  %v1573_v39 = vcombine.low %v1565_v38, %v1572_v51  ;;  %v2215_v52 = vrot.slane %v2193_v19, %v3681_v5 }
  0x9d   :  { %v2182_v24 = vrot.slane %v2174_v59, %v3681_v5  ;;  %v2222_v61 = vrot.slane %v3421_v23, %v3681_v5  ;;  %v1693_v2 = vunpack.c.l.s4 %v3626_v55  ;;  %v2663_v6 = vcombine.high %v3429_v28, %v3429_v28  ;;  %p3601_p6 = pnand %p3600_p5, %p3594_p2 }
  0x9e   :  { %v2189_v53 = vrot.slane %v2175_v40, %v3681_v5  ;;  %v2223_v62 = vcombine.low %v2201_v49, %v2208_v37  ;;  %3508 = vmatmul.mubr.msk.bf16.gmra.mrb[8].mxu0 %vm1180_vm15, %v1573_v39  ;;  %vm3297_vm4 = vcmask 1044484   ;;  %vm3299_vm5 = vcmask 1045509  }
  0x9f   :  { %v2224_v46 = vcombine.low %v2215_v52, %v2222_v61  ;;  %v1694_v15 = vunpack.c.0.s8 %v1693_v2  ;;  %vm3301_vm6 = vcmask 1046534   ;;  %vm3303_vm7 = vcmask 1047559  }
  0xa0   :  { %v2190_v31 = vcombine.low %v2182_v24, %v2189_v53  ;;  %v2231_v8 = vrot.slane %v2223_v62, %v3681_v5 }
  0xa1   :  { %v2238_v44 = vrot.slane %v2224_v46, %v3681_v5  ;;  %v4331_v32 = vsub.s32 %v1694_v15, %v4799_v56 }
  0xa2   :  { %3521 = vmatprep.mubr.msk.bf16.mxu1 %vm1180_vm15, %v2190_v31 }
  0xa3   :  { %v2239_v1 = vcombine.low %v2231_v8, %v2238_v44  ;;  %v4341_v63 = vrot.slane %v3429_v28, %v4331_v32  ;;  %v4355_v54 = vrot.slane %v2663_v6, %v4331_v32 }
  0xa5   :  { %3522 = vmatmul.mubr.msk.bf16.gmra.mrb[16].mxu1 %vm1180_vm15, %v2239_v1  ;;  %v4359_v12 = vcombine.high %v4341_v63, %v4341_v63 }
 0x13a   :  { %v4316_v41 = vpop.f32.mrb[0].mxu1 }
 0x13b   :  { %v4318_v47 = vpop.f32.mrb[1].mxu1 }
 0x13c   :  { %v4320_v60 = vpop.f32.mrb[2].mxu1 }
 0x13d   :  { %v4322_v43 = vpop.f32.mrb[3].mxu1 }
 0x153   :  { %v4324_v36 = vpop.f32.mrb[4].mxu1 }
 0x154   :  { %v4326_v30 = vpop.f32.mrb[5].mxu1 }
 0x155   :  { %v4328_v5 = vpop.f32.mrb[6].mxu1 }
 0x156   :  { %v4336_v50 = vpop.f32.mrb[7].mxu1 }
 0x157   :  { %v3501_v18 = vpop.f32.mrb[0].mxu0 }
 0x158   :  { %v1725_v11 = vcombine.high %v3501_v18, %v3501_v18  ;;  %v1632_v3 = vpop.f32.mrb[1].mxu0  ;;  %v1732_v10 = vrot.slane %v3501_v18, %v4331_v32 }
 0x159   :  { %v1691_v45 = vcombine.high %v1632_v3, %v1632_v3  ;;  %v1698_v22 = vrot.slane %v1632_v3, %v4331_v32  ;;  %v3502_v34 = vpop.f32.mrb[2].mxu0 }
 0x15a   :  { %v1739_v14 = vrot.slane %v1725_v11, %v4331_v32  ;;  %v1742_v42 = vcombine.high %v3502_v34, %v3502_v34  ;;  %v4345_v57 = vrot.slane %v3502_v34, %v4331_v32  ;;  %v1635_v16 = vpop.f32.mrb[3].mxu0  ;;  %v1740_v13 = vcombine.high %v1732_v10, %v1732_v10 }
 0x15b   :  { %v1705_v17 = vrot.slane %v1691_v45, %v4331_v32  ;;  %v1708_v25 = vcombine.high %v1635_v16, %v1635_v16  ;;  %v4349_v58 = vrot.slane %v1635_v16, %v4331_v32  ;;  %v1706_v26 = vcombine.high %v1698_v22, %v1698_v22 }
 0x15c   :  { %v4352_v0 = vrot.slane %v1742_v42, %v4331_v32  ;;  %v1741_v20 = vcombine.high %v1739_v14, %v1739_v14  ;;  %v1757_v48 = vcombine.high %v4345_v57, %v4345_v57 }
 0x15d   :  { %v1707_v27 = vcombine.high %v1705_v17, %v1705_v17  ;;  %v4365_v38 = vrot.slane %v1708_v25, %v4331_v32  ;;  %v1723_v35 = vcombine.high %v4349_v58, %v4349_v58 }
 0x15e   :  { %v3515_v4 = vpop.f32.mrb[8].mxu1  ;;  %v1758_v7 = vcombine.high %v4352_v0, %v4352_v0 }
 0x15f   :  { %v2391_v33 = vcombine.high %v3515_v4, %v3515_v4  ;;  %v2398_v9 = vrot.slane %v3515_v4, %v4331_v32  ;;  %v2298_v29 = vpop.f32.mrb[9].mxu1  ;;  %v1724_v18 = vcombine.high %v4365_v38, %v4365_v38 }
 0x160   :  { %v2357_v21 = vcombine.high %v2298_v29, %v2298_v29  ;;  %v2364_v51 = vrot.slane %v2298_v29, %v4331_v32  ;;  %v3516_v59 = vpop.f32.mrb[10].mxu1 }
 0x161   :  { %v2405_v19 = vrot.slane %v2391_v33, %v4331_v32  ;;  %v2406_v23 = vcombine.high %v2398_v9, %v2398_v9  ;;  %v2617_v40 = vadd.f32 %v2398_v9, %v1732_v10  ;;  %v2301_v49 = vpop.f32.mrb[11].mxu1  ;;  %v2408_v52 = vcombine.high %v3516_v59, %v3516_v59 }
 0x162   :  { %v2371_v37 = vrot.slane %v2357_v21, %v4331_v32  ;;  %v2372_v39 = vcombine.high %v2364_v51, %v2364_v51  ;;  %v2609_v24 = vadd.f32 %v2364_v51, %v1698_v22  ;;  %v2415_v56 = vrot.slane %v3516_v59, %v4331_v32 }
 0x163   :  { %v2407_v61 = vcombine.high %v2405_v19, %v2405_v19  ;;  %v2618_v53 = vadd.f32 %v2406_v23, %v1740_v13  ;;  %v2619_v62 = vadd.f32 %v2405_v19, %v1739_v14  ;;  %v4375_v46 = vadd.f32 %v4355_v54, %v2617_v40 }
 0x164   :  { %v2373_v31 = vcombine.high %v2371_v37, %v2371_v37  ;;  %v2610_v8 = vadd.f32 %v2372_v39, %v1706_v26  ;;  %v2611_v44 = vadd.f32 %v2371_v37, %v1705_v17  ;;  %v2682_v1 = vadd.f32 %v4341_v63, %v2609_v24  ;;  %v4381_v28 = vpop.f32.mrb[4].mxu0 }
 0x165   :  { %v2620_v55 = vadd.f32 %v2407_v61, %v1741_v20  ;;  %v2691_v2 = vadd.f32 %v4341_v63, %v2618_v53  ;;  %v2692_v15 = vadd.f32 %v4359_v12, %v2619_v62  ;;  %v4387_v10 = vpop.f32.mrb[5].mxu0  ;;  %v2738_v22 = vmax.f32 %v4375_v46, 0.0 }
 0x166   :  { %v2612_v11 = vadd.f32 %v2373_v31, %v1707_v27  ;;  %v2683_v3 = vadd.f32 %v4359_v12, %v2610_v8  ;;  %v2684_v6 = vadd.f32 %v4355_v54, %v2611_v44  ;;  %v4391_v42 = vpop.f32.mrb[6].mxu0  ;;  %v2730_v16 = vmax.f32 %v2682_v1, 0.0 }
 0x167   :  { %v2693_v45 = vadd.f32 %v4355_v54, %v2620_v55  ;;  %v2739_v34 = vmax.f32 %v2691_v2, 0.0  ;;  %v2740_v14 = vmax.f32 %v2692_v15, 0.0  ;;  %v2422_v13 = vrot.slane %v2408_v52, %v4331_v32  ;;  %v4394_v20 = vpop.f32.mrb[7].mxu0 }
 0x168   :  { %v2731_v17 = vmax.f32 %v2683_v3, 0.0  ;;  %v2732_v25 = vmax.f32 %v2684_v6, 0.0  ;;  %v2423_v27 = vcombine.high %v2415_v56, %v2415_v56  ;;  %v2621_v33 = vadd.f32 %v2415_v56, %v4345_v57 }
 0x169   :  { %v2741_v26 = vmax.f32 %v2693_v45, 0.0  ;;  %v2874_v4 = vcombine.low %v2739_v34, %v2740_v14  ;;  %v2424_v21 = vcombine.high %v2422_v13, %v2422_v13  ;;  %v2623_v51 = vadd.f32 %v2422_v13, %v4352_v0 }
 0x16a   :  { %v2826_v9 = vcombine.low %v2730_v16, %v2731_v17  ;;  %v2840_v29 = vrot.slane %v2732_v25, %v4331_v32  ;;  %v2622_v23 = vadd.f32 %v2423_v27, %v1757_v48  ;;  %v2694_v40 = vadd.f32 %v4341_v63, %v2621_v33 }
 0x16b   :  { %v2881_v59 = vrot.slane %v2874_v4, %v4331_v32  ;;  %v2888_v19 = vrot.slane %v2741_v26, %v4331_v32  ;;  %v4402_v37 = vpop.f32.mrb[12].mxu1  ;;  %v4405_v24 = vadd.f32 %v2424_v21, %v1758_v7  ;;  %v2696_v57 = vadd.f32 %v4355_v54, %v2623_v51 }
 0x16c   :  { %v2833_v39 = vrot.slane %v2826_v9, %v4331_v32  ;;  %v2374_v52 = vcombine.high %v2301_v49, %v2301_v49  ;;  %v4408_v61 = vpop.f32.mrb[13].mxu1  ;;  %v2685_v0 = vadd.f32 %v4341_v63, %v2612_v11  ;;  %v2695_v62 = vadd.f32 %v4359_v12, %v2622_v23 }
 0x16d   :  { %v2889_v53 = vcombine.low %v2881_v59, %v2888_v19  ;;  %v2381_v48 = vrot.slane %v2301_v49, %v4331_v32  ;;  %v4413_v31 = vpop.f32.mrb[14].mxu1  ;;  %v2742_v44 = vmax.f32 %v2694_v40, 0.0  ;;  %v2744_v1 = vmax.f32 %v2696_v57, 0.0 }
 0x16e   :  { %v2841_v8 = vcombine.low %v2833_v39, %v2840_v29  ;;  %v2388_v7 = vrot.slane %v2374_v52, %v4331_v32  ;;  %v4416_v55 = vpop.f32.mrb[15].mxu1  ;;  %v2743_v15 = vmax.f32 %v2695_v62, 0.0  ;;  %v2733_v4 = vmax.f32 %v2685_v0, 0.0 }
 0x16f   :  { %v3120_v2 = vsel %vm3098_vm0, %v2889_v53, -inf  ;;  %v2389_v56 = vcombine.high %v2381_v48, %v2381_v48  ;;  %v2613_v3 = vadd.f32 %v2381_v48, %v4349_v58  ;;  %v2904_v49 = vrot.slane %v2744_v1, %v4331_v32 }
 0x170   :  { %v3121_v11 = vrot.slane %v3120_v2, 4  ;;  %v3099_v6 = vsel %vm3098_vm0, %v2841_v8, -inf  ;;  %v2390_v45 = vcombine.high %v2388_v7, %v2388_v7  ;;  %v2890_v14 = vcombine.low %v2742_v44, %v2743_v15 }
 0x171   :  { %v3100_v34 = vrot.slane %v3099_v6, 4  ;;  %v2614_v16 = vadd.f32 %v2389_v56, %v1723_v35  ;;  %v2615_v17 = vadd.f32 %v2388_v7, %v4365_v38  ;;  %v2686_v26 = vadd.f32 %v4359_v12, %v2613_v3  ;;  %v4427_v27 = vpop.f32.mrb[8].mxu0 }
 0x172   :  { %v3122_v25 = vmax.f32 %v3120_v2, %v3121_v11  ;;  %v2616_v13 = vadd.f32 %v2390_v45, %v1724_v18  ;;  %v2897_v9 = vrot.slane %v2890_v14, %v4331_v32  ;;  %v4432_v51 = vpop.f32.mrb[9].mxu0  ;;  %v1657_v18 = vadd.f32 %v4381_v28, %v4316_v41 }
 0x173   :  { %v3101_v33 = vmax.f32 %v3099_v6, %v3100_v34  ;;  %v2687_v29 = vadd.f32 %v4355_v54, %v2614_v16  ;;  %v2688_v21 = vadd.f32 %v4341_v63, %v2615_v17  ;;  %v2734_v38 = vmax.f32 %v2686_v26, 0.0  ;;  %v4437_v59 = vpop.f32.mrb[10].mxu0 }
 0x174   :  { %v3123_v58 = vrot.slane %v3122_v25, 2  ;;  %v2689_v35 = vadd.f32 %v4359_v12, %v2616_v13  ;;  %v2905_v23 = vcombine.low %v2897_v9, %v2904_v49  ;;  %v4439_v39 = vpop.f32.mrb[11].mxu0  ;;  %v1793_v0 = vcombine.high %v1657_v18, %v1657_v18 }
 0x175   :  { %v3102_v19 = vrot.slane %v3101_v33, 2  ;;  %v2735_v40 = vmax.f32 %v2687_v29, 0.0  ;;  %v2736_v57 = vmax.f32 %v2688_v21, 0.0  ;;  %v2842_v53 = vcombine.low %v2733_v4, %v2734_v38 }
 0x176   :  { %v2737_v52 = vmax.f32 %v2689_v35, 0.0  ;;  %v2872_v62 = vrot.slane %v2738_v22, %v4331_v32  ;;  %v4444_v48 = vmax.f32 %v3122_v25, %v3123_v58  ;;  %v3127_v41 = vsel %vm3098_vm0, %v2905_v23, -inf }
 0x177   :  { %v3103_v8 = vmax.f32 %v3101_v33, %v3102_v19  ;;  %v3128_v28 = vrot.slane %v3127_v41, 4  ;;  %v2849_v44 = vrot.slane %v2842_v53, %v4331_v32  ;;  %v2856_v1 = vrot.slane %v2735_v40, %v4331_v32 }
 0x178   :  { %v2858_v7 = vcombine.low %v2736_v57, %v2737_v52  ;;  %v4449_v2 = vpop.f32.mrb[16].mxu1  ;;  %v1800_v56 = vrot.slane %v1657_v18, %v4331_v32  ;;  %v1807_v3 = vrot.slane %v1793_v0, %v4331_v32  ;;  %v1649_v46 = vadd.f32 %v4387_v10, %v4318_v47 }
 0x179   :  { %v3104_v15 = vrot.slane %v3103_v8, 1  ;;  %v4455_v22 = vpop.f32.mrb[17].mxu1  ;;  %v3129_v11 = vmax.f32 %v3127_v41, %v3128_v28  ;;  %v2857_v6 = vcombine.low %v2849_v44, %v2856_v1  ;;  %v1660_v45 = vadd.f32 %v4391_v42, %v4320_v60 }
 0x17a   :  { %v2865_v49 = vrot.slane %v2858_v7, %v4331_v32  ;;  %v4460_v34 = vpop.f32.mrb[18].mxu1  ;;  %v4464_v16 = vadd.f32 %v4341_v63, %v4405_v24  ;;  %v1759_v17 = vcombine.high %v1649_v46, %v1649_v46  ;;  %v1766_v25 = vrot.slane %v1649_v46, %v4331_v32 }
 0x17b   :  { %v3105_v14 = vmax.f32 %v3103_v8, %v3104_v15  ;;  %v4467_v47 = vpop.f32.mrb[19].mxu1  ;;  %v3130_v10 = vrot.slane %v3129_v11, 2  ;;  %v3106_v26 = vsel %vm3098_vm0, %v2857_v6, -inf  ;;  %v1810_v4 = vcombine.high %v1660_v45, %v1660_v45 }
 0x17c   :  { %v2873_v13 = vcombine.low %v2865_v49, %v2872_v62  ;;  %v3125_v33 = vrot.slane %v4444_v48, 1  ;;  %v3107_v42 = vrot.slane %v3106_v26, 4  ;;  %v1773_v9 = vrot.slane %v1759_v17, %v4331_v32 }
 0x17d   :  { %v3446_v60 = vpack.c.bf16 %v3105_v14, %v3105_v14  ;;  %v4472_v29 = vmax.f32 %v3129_v11, %v3130_v10  ;;  %v1808_v21 = vcombine.high %v1800_v56, %v1800_v56  ;;  %v1809_v58 = vcombine.high %v1807_v3, %v1807_v3 }
 0x17e   :  { %v3113_v24 = vsel %vm3098_vm0, %v2873_v13, -inf  ;;  %v3108_v35 = vmax.f32 %v3106_v26, %v3107_v42  ;;  %v1774_v18 = vcombine.high %v1766_v25, %v1766_v25  ;;  %v4476_v19 = vrot.slane %v1660_v45, %v4331_v32 }
 0x17f   :  { %v3114_v38 = vrot.slane %v3113_v24, 4  ;;  %v4478_v23 = vunpack.c.l.b16 %v3446_v60  ;;  %v1775_v40 = vcombine.high %v1773_v9, %v1773_v9  ;;  %v4481_v57 = vrot.slane %v1810_v4, %v4331_v32 }
 0x180   :  { %v1652_v52 = vadd.f32 %v4394_v20, %v4322_v43  ;;  %v3109_v53 = vrot.slane %v3108_v35, 2  ;;  %v2459_v62 = vcombine.high %v4402_v37, %v4402_v37  ;;  %v2466_v8 = vrot.slane %v4402_v37, %v4331_v32 }
 0x181   :  { %v3115_v0 = vmax.f32 %v3113_v24, %v3114_v38  ;;  %v3132_v41 = vrot.slane %v4472_v29, 1  ;;  %v2425_v44 = vcombine.high %v4408_v61, %v4408_v61  ;;  %v2432_v1 = vrot.slane %v4408_v61, %v4331_v32 }
 0x182   :  { %v1776_v28 = vcombine.high %v1652_v52, %v1652_v52  ;;  %v3110_v7 = vmax.f32 %v3108_v35, %v3109_v53  ;;  %v2473_v43 = vrot.slane %v2459_v62, %v4331_v32  ;;  %v2474_v20 = vcombine.high %v2466_v8, %v2466_v8 }
 0x183   :  { %v3116_v15 = vrot.slane %v3115_v0, 2  ;;  %v4496_v46 = vrot.slane %v1652_v52, %v4331_v32  ;;  %v2633_v37 = vadd.f32 %v2466_v8, %v1800_v56  ;;  %v2439_v6 = vrot.slane %v2425_v44, %v4331_v32 }
 0x184   :  { %v4499_v11 = vrot.slane %v1776_v28, %v4331_v32  ;;  %v3111_v49 = vrot.slane %v3110_v7, 1  ;;  %v2475_v14 = vcombine.high %v2473_v43, %v2473_v43  ;;  %v2634_v17 = vadd.f32 %v2474_v20, %v1808_v21 }
 0x185   :  { %v3117_v45 = vmax.f32 %v3115_v0, %v3116_v15  ;;  %v1825_v61 = vcombine.high %v4476_v19, %v4476_v19  ;;  %v2635_v10 = vadd.f32 %v2473_v43, %v1807_v3  ;;  %v2706_v13 = vadd.f32 %v4341_v63, %v2633_v37 }
 0x186   :  { %v2440_v26 = vcombine.high %v2432_v1, %v2432_v1  ;;  %v1826_v60 = vcombine.high %v4481_v57, %v4481_v57  ;;  %v2636_v42 = vadd.f32 %v2475_v14, %v1809_v58  ;;  %v2707_v56 = vadd.f32 %v4359_v12, %v2634_v17 }
 0x187   :  { %v3118_v4 = vrot.slane %v3117_v45, 1  ;;  %v1791_v24 = vcombine.high %v4496_v46, %v4496_v46  ;;  %v2708_v35 = vadd.f32 %v4355_v54, %v2635_v10  ;;  %v2441_v21 = vcombine.high %v2439_v6, %v2439_v6 }
 0x188   :  { %v2625_v38 = vadd.f32 %v2432_v1, %v1766_v25  ;;  %v4511_v52 = vmax.f32 %v3110_v7, %v3111_v49  ;;  %v1792_v3 = vcombine.high %v4499_v11, %v4499_v11  ;;  %v2754_v53 = vmax.f32 %v2706_v13, 0.0 }
 0x189   :  { %v2755_v0 = vmax.f32 %v2707_v56, 0.0  ;;  %v2756_v62 = vmax.f32 %v2708_v35, 0.0  ;;  %v2626_v8 = vadd.f32 %v2440_v26, %v1774_v18  ;;  %v2627_v28 = vadd.f32 %v2439_v6, %v1773_v9 }
 0x18a   :  { %v2628_v58 = vadd.f32 %v2441_v21, %v1775_v40  ;;  %v4515_v44 = vmax.f32 %v3117_v45, %v3118_v4  ;;  %v2709_v15 = vadd.f32 %v4341_v63, %v2636_v42  ;;  %v2698_v20 = vadd.f32 %v4359_v12, %v2625_v38 }
 0x18b   :  { %v2954_v43 = vcombine.low %v2754_v53, %v2755_v0  ;;  %v2968_v25 = vrot.slane %v2756_v62, %v4331_v32  ;;  %v2699_v1 = vadd.f32 %v4355_v54, %v2626_v8  ;;  %v2700_v7 = vadd.f32 %v4341_v63, %v2627_v28 }
 0x18c   :  { %v2701_v37 = vadd.f32 %v4359_v12, %v2628_v58  ;;  %v2745_v9 = vmax.f32 %v4464_v16, 0.0  ;;  %v2746_v18 = vmax.f32 %v2698_v20, 0.0  ;;  %v2476_v40 = vcombine.high %v4413_v31, %v4413_v31 }
 0x18d   :  { %v2961_v49 = vrot.slane %v2954_v43, %v4331_v32  ;;  %v2747_v6 = vmax.f32 %v2699_v1, 0.0  ;;  %v2748_v45 = vmax.f32 %v2700_v7, 0.0  ;;  %v2483_v17 = vrot.slane %v4413_v31, %v4331_v32 }
 0x18e   :  { %v2749_v14 = vmax.f32 %v2701_v37, 0.0  ;;  %v2906_v13 = vcombine.low %v2745_v9, %v2746_v18  ;;  %v2490_v26 = vrot.slane %v2476_v40, %v4331_v32  ;;  %v2757_v4 = vmax.f32 %v2709_v15, 0.0 }
 0x18f   :  { %v2969_v10 = vcombine.low %v2961_v49, %v2968_v25  ;;  %v2920_v42 = vrot.slane %v2747_v6, %v4331_v32  ;;  %v2491_v35 = vcombine.high %v2483_v17, %v2483_v17  ;;  %v2637_v16 = vadd.f32 %v2483_v17, %v4476_v19 }
 0x190   :  { %v2922_v56 = vcombine.low %v2748_v45, %v2749_v14  ;;  %v2913_v38 = vrot.slane %v2906_v13, %v4331_v32  ;;  %v2492_v53 = vcombine.high %v2490_v26, %v2490_v26  ;;  %v2639_v0 = vadd.f32 %v2490_v26, %v4481_v57 }
 0x191   :  { %v3155_v21 = vsel %vm3098_vm0, %v2969_v10, -inf  ;;  %v2638_v31 = vadd.f32 %v2491_v35, %v1825_v61  ;;  %v2710_v8 = vadd.f32 %v4359_v12, %v2637_v16  ;;  %v2442_v28 = vcombine.high %v4416_v55, %v4416_v55 }
 0x192   :  { %v3156_v62 = vrot.slane %v3155_v21, 4  ;;  %v2921_v58 = vcombine.low %v2913_v38, %v2920_v42  ;;  %v2640_v15 = vadd.f32 %v2492_v53, %v1826_v60  ;;  %v2712_v43 = vadd.f32 %v4341_v63, %v2639_v0 }
 0x193   :  { %v2449_v19 = vrot.slane %v4416_v55, %v4331_v32  ;;  %v2711_v25 = vadd.f32 %v4355_v54, %v2638_v31  ;;  %v2758_v1 = vmax.f32 %v2710_v8, 0.0  ;;  %v2456_v57 = vrot.slane %v2442_v28, %v4331_v32 }
 0x194   :  { %v3157_v20 = vmax.f32 %v3155_v21, %v3156_v62  ;;  %v3134_v61 = vsel %vm3098_vm0, %v2921_v58, -inf  ;;  %v2713_v7 = vadd.f32 %v4359_v12, %v2640_v15  ;;  %v2760_v37 = vmax.f32 %v2712_v43, 0.0 }
 0x195   :  { %v2457_v49 = vcombine.high %v2449_v19, %v2449_v19  ;;  %v3135_v18 = vrot.slane %v3134_v61, 4  ;;  %v2759_v60 = vmax.f32 %v2711_v25, 0.0  ;;  %v2970_v40 = vcombine.low %v2757_v4, %v2758_v1 }
 0x196   :  { %v3158_v9 = vrot.slane %v3157_v20, 2  ;;  %v2761_v6 = vmax.f32 %v2713_v7, 0.0  ;;  %v2458_v45 = vcombine.high %v2456_v57, %v2456_v57  ;;  %v2629_v55 = vadd.f32 %v2449_v19, %v4496_v46 }
 0x197   :  { %v2630_v14 = vadd.f32 %v2457_v49, %v1791_v24  ;;  %v3136_v10 = vmax.f32 %v3134_v61, %v3135_v18  ;;  %v2977_v13 = vrot.slane %v2970_v40, %v4331_v32  ;;  %v2984_v26 = vrot.slane %v2759_v60, %v4331_v32 }
 0x198   :  { %v3159_v17 = vmax.f32 %v3157_v20, %v3158_v9  ;;  %v4551_v42 = vcombine.low %v2760_v37, %v2761_v6  ;;  %v2631_v35 = vadd.f32 %v2456_v57, %v4499_v11  ;;  %v2632_v4 = vadd.f32 %v2458_v45, %v1792_v3 }
 0x199   :  { %v2702_v16 = vadd.f32 %v4355_v54, %v2629_v55  ;;  %v3447_v46 = vpack.c.bf16 %v4511_v52, %v4511_v52  ;;  %v2985_v21 = vcombine.low %v2977_v13, %v2984_v26  ;;  %v2703_v38 = vadd.f32 %v4341_v63, %v2630_v14 }
 0x19a   :  { %v3160_v24 = vrot.slane %v3159_v17, 1  ;;  %v2704_v53 = vadd.f32 %v4359_v12, %v2631_v35  ;;  %v2705_v0 = vadd.f32 %v4355_v54, %v2632_v4  ;;  %v2929_v31 = vrot.slane %v2922_v56, %v4331_v32 }
 0x19b   :  { %v2750_v62 = vmax.f32 %v2702_v16, 0.0  ;;  %v3137_v28 = vrot.slane %v3136_v10, 2  ;;  %v3162_v11 = vsel %vm3098_vm0, %v2985_v21, -inf  ;;  %v2751_v3 = vmax.f32 %v2703_v38, 0.0 }
 0x19c   :  { %v3161_v8 = vmax.f32 %v3159_v17, %v3160_v24  ;;  %v3163_v58 = vrot.slane %v3162_v11, 4  ;;  %v2752_v15 = vmax.f32 %v2704_v53, 0.0  ;;  %v2753_v43 = vmax.f32 %v2705_v0, 0.0 }
 0x19d   :  { %v2936_v52 = vrot.slane %v2750_v62, %v4331_v32  ;;  %v1673_v20 = vadd.f32 %v4427_v27, %v4324_v36  ;;  %v1665_v25 = vadd.f32 %v4432_v51, %v4326_v30  ;;  %v1676_v56 = vadd.f32 %v4437_v59, %v4328_v5 }
 0x19e   :  { %v3454_v19 = vpack.c.bf16 %v3161_v8, %v3161_v8  ;;  %v3164_v1 = vmax.f32 %v3162_v11, %v3163_v58  ;;  %v2938_v61 = vcombine.low %v2751_v3, %v2752_v15  ;;  %v2952_v7 = vrot.slane %v2753_v43, %v4331_v32 }
 0x19f   :  { %v2937_v57 = vcombine.low %v2929_v31, %v2936_v52  ;;  %v3448_v37 = vpack.c.bf16 %v4515_v44, %v4515_v44  ;;  %v1861_v49 = vcombine.high %v1673_v20, %v1673_v20  ;;  %v1868_v9 = vrot.slane %v1673_v20, %v4331_v32 }
 0x1a0   :  { %v1827_v18 = vcombine.high %v1665_v25, %v1665_v25  ;;  %v4576_v60 = vunpack.c.l.b16 %v3447_v46  ;;  %v3165_v36 = vrot.slane %v3164_v1, 2  ;;  %v2945_v30 = vrot.slane %v2938_v61, %v4331_v32 }
 0x1a1   :  { %v3141_v27 = vsel %vm3098_vm0, %v2937_v57, -inf  ;;  %v4580_v5 = vmax.f32 %v3136_v10, %v3137_v28  ;;  %v1875_v59 = vrot.slane %v1861_v49, %v4331_v32  ;;  %v1834_v40 = vrot.slane %v1665_v25, %v4331_v32 }
 0x1a2   :  { %v3142_v51 = vrot.slane %v3141_v27, 4  ;;  %v4584_v6 = vunpack.c.l.b16 %v3454_v19  ;;  %v3166_v45 = vmax.f32 %v3164_v1, %v3165_v36  ;;  %v4586_v55 = vcombine.low %v2945_v30, %v2952_v7 }
 0x1a3   :  { %v1878_v14 = vcombine.high %v1676_v56, %v1676_v56  ;;  %v1876_v13 = vcombine.high %v1868_v9, %v1868_v9  ;;  %v1841_v26 = vrot.slane %v1827_v18, %v4331_v32  ;;  %v4590_v35 = vrot.slane %v1676_v56, %v4331_v32 }
 0x1a4   :  { %v3143_v17 = vmax.f32 %v3141_v27, %v3142_v51  ;;  %v3167_v10 = vrot.slane %v3166_v45, 1  ;;  %v1668_v16 = vadd.f32 %v4439_v39, %v4336_v50  ;;  %v2527_v46 = vcombine.high %v4449_v2, %v4449_v2 }
 0x1a5   :  { %v4593_v4 = vrot.slane %v1878_v14, %v4331_v32  ;;  %v1877_v21 = vcombine.high %v1875_v59, %v1875_v59  ;;  %v1842_v38 = vcombine.high %v1834_v40, %v1834_v40  ;;  %v2534_v53 = vrot.slane %v4449_v2, %v4331_v32 }
 0x1a6   :  { %v3144_v24 = vrot.slane %v3143_v17, 2  ;;  %v4601_v0 = vmax.f32 %v3166_v45, %v3167_v10  ;;  %v1844_v62 = vcombine.high %v1668_v16, %v1668_v16  ;;  %v4604_v31 = vrot.slane %v1668_v16, %v4331_v32 }
 0x1a7   :  { %v2493_v8 = vcombine.high %v4455_v22, %v4455_v22  ;;  %v1843_v28 = vcombine.high %v1841_v26, %v1841_v26  ;;  %v2541_v50 = vrot.slane %v2527_v46, %v4331_v32  ;;  %v2542_v39 = vcombine.high %v2534_v53, %v2534_v53 }
 0x1a8   :  { %v2649_v11 = vadd.f32 %v2534_v53, %v1868_v9  ;;  %v4609_v3 = vmax.f32 %v3143_v17, %v3144_v24  ;;  %v1893_v58 = vcombine.high %v4590_v35, %v4590_v35  ;;  %v1894_v2 = vcombine.high %v4593_v4, %v4593_v4 }
 0x1a9   :  { %v2500_v15 = vrot.slane %v4455_v22, %v4331_v32  ;;  %v4618_v43 = vrot.slane %v1844_v62, %v4331_v32  ;;  %v2543_v52 = vcombine.high %v2541_v50, %v2541_v50  ;;  %v2650_v19 = vadd.f32 %v2542_v39, %v1876_v13 }
 0x1aa   :  { %v2651_v20 = vadd.f32 %v2541_v50, %v1875_v59  ;;  %v3455_v25 = vpack.c.bf16 %v4601_v0, %v4601_v0  ;;  %v1859_v56 = vcombine.high %v4604_v31, %v4604_v31  ;;  %v2507_v1 = vrot.slane %v2493_v8, %v4331_v32 }
 0x1ab   :  { %v2508_v57 = vcombine.high %v2500_v15, %v2500_v15  ;;  %v2652_v61 = vadd.f32 %v2543_v52, %v1877_v21  ;;  %v4626_v7 = vadd.f32 %v4359_v12, %v2649_v11  ;;  %v4629_v22 = vadd.f32 %v4355_v54, %v2650_v19 }
 0x1ac   :  { %v2724_v49 = vadd.f32 %v4341_v63, %v2651_v20  ;;  %v2509_v9 = vcombine.high %v2507_v1, %v2507_v1  ;;  %v2641_v18 = vadd.f32 %v2500_v15, %v1834_v40  ;;  %v2643_v30 = vadd.f32 %v2507_v1, %v1841_v26 }
 0x1ad   :  { %v2642_v36 = vadd.f32 %v2508_v57, %v1842_v38  ;;  %v1860_v27 = vcombine.high %v4618_v43, %v4618_v43  ;;  %v2725_v51 = vadd.f32 %v4359_v12, %v2652_v61  ;;  %v2771_v59 = vmax.f32 %v4629_v22, 0.0 }
 0x1ae   :  { %v2772_v45 = vmax.f32 %v2724_v49, 0.0  ;;  %v2644_v14 = vadd.f32 %v2509_v9, %v1843_v28  ;;  %v2714_v17 = vadd.f32 %v4355_v54, %v2641_v18  ;;  %v2716_v10 = vadd.f32 %v4359_v12, %v2643_v30 }
 0x1af   :  { %v2715_v13 = vadd.f32 %v4341_v63, %v2642_v36  ;;  %v2773_v16 = vmax.f32 %v2725_v51, 0.0  ;;  %v2993_v40 = vrot.slane %v4551_v42, %v4331_v32  ;;  %v2544_v26 = vcombine.high %v4460_v34, %v4460_v34 }
 0x1b0   :  { %v2551_v46 = vrot.slane %v4460_v34, %v4331_v32  ;;  %v2717_v24 = vadd.f32 %v4355_v54, %v2644_v14  ;;  %v2762_v21 = vmax.f32 %v2714_v17, 0.0  ;;  %v2764_v53 = vmax.f32 %v2716_v10, 0.0 }
 0x1b1   :  { %v2763_v38 = vmax.f32 %v2715_v13, 0.0  ;;  %v3050_v62 = vcombine.low %v2772_v45, %v2773_v16  ;;  %v2558_v8 = vrot.slane %v2544_v26, %v4331_v32  ;;  %v2510_v15 = vcombine.high %v4467_v47, %v4467_v47 }
 0x1b2   :  { %v2559_v28 = vcombine.high %v2551_v46, %v2551_v46  ;;  %v2653_v50 = vadd.f32 %v2551_v46, %v4590_v35  ;;  %v2765_v39 = vmax.f32 %v2717_v24, 0.0  ;;  %v3000_v42 = vrot.slane %v2762_v21, %v4331_v32 }
 0x1b3   :  { %v3002_v11 = vcombine.low %v2763_v38, %v2764_v53  ;;  %v2560_v52 = vcombine.high %v2558_v8, %v2558_v8  ;;  %v2655_v19 = vadd.f32 %v2558_v8, %v4593_v4  ;;  %v3057_v35 = vrot.slane %v3050_v62, %v4331_v32 }
 0x1b4   :  { %v2654_v34 = vadd.f32 %v2559_v28, %v1893_v58  ;;  %v2726_v20 = vadd.f32 %v4355_v54, %v2653_v50  ;;  %v3001_v1 = vcombine.low %v2993_v40, %v3000_v42  ;;  %v3016_v61 = vrot.slane %v2765_v39, %v4331_v32 }
 0x1b5   :  { %v3009_v57 = vrot.slane %v3002_v11, %v4331_v32  ;;  %v2656_v49 = vadd.f32 %v2560_v52, %v1894_v2  ;;  %v2728_v18 = vadd.f32 %v4359_v12, %v2655_v19  ;;  %v2517_v4 = vrot.slane %v4467_v47, %v4331_v32 }
 0x1b6   :  { %v2727_v9 = vadd.f32 %v4341_v63, %v2654_v34  ;;  %v2774_v36 = vmax.f32 %v2726_v20, 0.0  ;;  %v3169_v58 = vsel %vm3098_vm0, %v3001_v1, -inf  ;;  %v2524_v51 = vrot.slane %v2510_v15, %v4331_v32 }
 0x1b7   :  { %v3017_v30 = vcombine.low %v3009_v57, %v3016_v61  ;;  %v3170_v45 = vrot.slane %v3169_v58, 4  ;;  %v2729_v14 = vadd.f32 %v4355_v54, %v2656_v49  ;;  %v2776_v13 = vmax.f32 %v2728_v18, 0.0 }
 0x1b8   :  { %v2775_v17 = vmax.f32 %v2727_v9, 0.0  ;;  %v3064_v10 = vrot.slane %v2774_v36, %v4331_v32  ;;  %v2525_v16 = vcombine.high %v2517_v4, %v2517_v4  ;;  %v2526_v40 = vcombine.high %v2524_v51, %v2524_v51 }
 0x1b9   :  { %v3176_v2 = vsel %vm3098_vm0, %v3017_v30, -inf  ;;  %v3171_v26 = vmax.f32 %v3169_v58, %v3170_v45  ;;  %v2777_v24 = vmax.f32 %v2729_v14, 0.0  ;;  %v2645_v47 = vadd.f32 %v2517_v4, %v4604_v31 }
 0x1ba   :  { %v3177_v46 = vrot.slane %v3176_v2, 4  ;;  %v3066_v21 = vcombine.low %v2775_v17, %v2776_v13  ;;  %v3065_v38 = vcombine.low %v3057_v35, %v3064_v10  ;;  %v2646_v53 = vadd.f32 %v2525_v16, %v1859_v56 }
 0x1bb   :  { %v2647_v62 = vadd.f32 %v2524_v51, %v4618_v43  ;;  %v3172_v8 = vrot.slane %v3171_v26, 2  ;;  %v3080_v39 = vrot.slane %v2777_v24, %v4331_v32  ;;  %v2648_v11 = vadd.f32 %v2526_v40, %v1860_v27 }
 0x1bc   :  { %v3178_v28 = vmax.f32 %v3176_v2, %v3177_v46  ;;  %v3073_v50 = vrot.slane %v3066_v21, %v4331_v32  ;;  %v3197_v42 = vsel %vm3098_vm0, %v3065_v38, -inf  ;;  %v2718_v15 = vadd.f32 %v4341_v63, %v2645_v47 }
 0x1bd   :  { %v2719_v52 = vadd.f32 %v4359_v12, %v2646_v53  ;;  %v3173_v34 = vmax.f32 %v3171_v26, %v3172_v8  ;;  %v3198_v31 = vrot.slane %v3197_v42, 4  ;;  %v2720_v56 = vadd.f32 %v4355_v54, %v2647_v62 }
 0x1be   :  { %v3179_v19 = vrot.slane %v3178_v28, 2  ;;  %v3081_v20 = vcombine.low %v3073_v50, %v3080_v39  ;;  %v2721_v43 = vadd.f32 %v4341_v63, %v2648_v11  ;;  %v2766_v1 = vmax.f32 %v2718_v15, 0.0 }
 0x1bf   :  { %v2767_v57 = vmax.f32 %v2719_v52, 0.0  ;;  %v2770_v61 = vmax.f32 %v4626_v7, 0.0  ;;  %v3174_v35 = vrot.slane %v3173_v34, 1  ;;  %v3199_v9 = vmax.f32 %v3197_v42, %v3198_v31 }
 0x1c0   :  { %v3180_v49 = vmax.f32 %v3178_v28, %v3179_v19  ;;  %v3048_v27 = vrot.slane %v2771_v59, %v4331_v32  ;;  %v2768_v12 = vmax.f32 %v2720_v56, 0.0  ;;  %v2769_v18 = vmax.f32 %v2721_v43, 0.0 }
 0x1c1   :  { %v3018_v36 = vcombine.low %v2766_v1, %v2767_v57  ;;  %v3175_v30 = vmax.f32 %v3173_v34, %v3174_v35  ;;  %v3200_v4 = vrot.slane %v3199_v9, 2  ;;  %v3139_v54 = vrot.slane %v4580_v5, 1 }
 0x1c2   :  { %v3181_v58 = vrot.slane %v3180_v49, 1  ;;  %v3032_v51 = vrot.slane %v2768_v12, %v4331_v32  ;;  %v3034_v7 = vcombine.low %v2769_v18, %v2770_v61  ;;  %v3146_v45 = vrot.slane %v4609_v3, 1 }
 0x1c3   :  { %v3025_v63 = vrot.slane %v3018_v36, %v4331_v32  ;;  %v3456_v14 = vpack.c.bf16 %v3175_v30, %v3175_v30  ;;  %v3126_v22 = vmax.f32 %v4444_v48, %v3125_v33  ;;  %v3133_v59 = vmax.f32 %v4472_v29, %v3132_v41 }
 0x1c4   :  { %v3148_v17 = vsel %vm3098_vm0, %v4586_v55, -inf  ;;  %v3041_v2 = vrot.slane %v3034_v7, %v4331_v32  ;;  %v3140_v10 = vmax.f32 %v4580_v5, %v3139_v54  ;;  %v3201_v40 = vmax.f32 %v3199_v9, %v3200_v4 }
 0x1c5   :  { %v3033_v13 = vcombine.low %v3025_v63, %v3032_v51  ;;  %v3149_v16 = vrot.slane %v3148_v17, 4  ;;  %v3147_v26 = vmax.f32 %v4609_v3, %v3146_v45  ;;  %v3182_v46 = vmax.f32 %v3180_v49, %v3181_v58 }
 0x1c6   :  { %v3204_v48 = vsel %vm3098_vm0, %v3081_v20, -inf  ;;  %v3049_v33 = vcombine.low %v3041_v2, %v3048_v27  ;;  %v3284_v32 = vunpack.c.l.b16 %v3455_v25  ;;  %v3449_v24 = vpack.c.bf16 %v3126_v22, %v3126_v22 }
 0x1c7   :  { %v3183_v29 = vsel %vm3098_vm0, %v3033_v13, -inf  ;;  %v3150_v41 = vmax.f32 %v3148_v17, %v3149_v16  ;;  %v3205_v55 = vrot.slane %v3204_v48, 4  ;;  %v3450_v21 = vpack.c.bf16 %v3133_v59, %v3133_v59 }
 0x1c8   :  { %v3184_v5 = vrot.slane %v3183_v29, 4  ;;  %v3190_v3 = vsel %vm3098_vm0, %v3049_v33, -inf  ;;  %v3451_v53 = vpack.c.bf16 %v3140_v10, %v3140_v10  ;;  %v3452_v28 = vpack.c.bf16 %v3147_v26, %v3147_v26 }
 0x1c9   :  { %v3151_v38 = vrot.slane %v3150_v41, 2  ;;  %v3206_v47 = vmax.f32 %v3204_v48, %v3205_v55  ;;  %v3191_v8 = vrot.slane %v3190_v3, 4  ;;  %v3457_v50 = vpack.c.bf16 %v3182_v46, %v3182_v46 }
 0x1ca   :  { %v3185_v62 = vmax.f32 %v3183_v29, %v3184_v5  ;;  %v3285_v39 = vunpack.c.l.b16 %v3456_v14  ;;  %v3202_v11 = vrot.slane %v3201_v40, 1  ;;  %v3277_v52 = vunpack.c.l.b16 %v3448_v37 }
 0x1cb   :  { %v3152_v42 = vmax.f32 %v3150_v41, %v3151_v38  ;;  %v3207_v0 = vrot.slane %v3206_v47, 2  ;;  %v3192_v15 = vmax.f32 %v3190_v3, %v3191_v8  ;;  %v3278_v34 = vunpack.c.l.b16 %v3449_v24 }
 0x1cc   :  { %v3186_v25 = vrot.slane %v3185_v62, 2  ;;  %v3279_v31 = vunpack.c.l.b16 %v3450_v21  ;;  %v3280_v56 = vunpack.c.l.b16 %v3451_v53  ;;  %v3281_v57 = vunpack.c.l.b16 %v3452_v28 }
 0x1cd   :  { %v3153_v19 = vrot.slane %v3152_v42, 1  ;;  %v3208_v20 = vmax.f32 %v3206_v47, %v3207_v0  ;;  %v3193_v1 = vrot.slane %v3192_v15, 2  ;;  %v3286_v61 = vunpack.c.l.b16 %v3457_v50 }
 0x1ce   :  { %v3187_v43 = vmax.f32 %v3185_v62, %v3186_v25  ;;  %v3292_v9 = vsel %vm3291_vm1, %v4576_v60, %v4478_v23  ;;  %v3305_v27 = vsel %vm3291_vm1, %v3284_v32, %v4584_v6  ;;  %v3203_v36 = vmax.f32 %v3201_v40, %v3202_v11 }
 0x1cf   :  { %v3154_v35 = vmax.f32 %v3152_v42, %v3153_v19  ;;  %v3209_v49 = vrot.slane %v3208_v20, 1  ;;  %v3194_v37 = vmax.f32 %v3192_v15, %v3193_v1  ;;  %v3294_v12 = vsel %vm3293_vm2, %v3277_v52, %v3292_v9 }
 0x1d0   :  { %v3188_v44 = vrot.slane %v3187_v43, 1  ;;  %v3306_v18 = vsel %vm3293_vm2, %v3285_v39, %v3305_v27  ;;  %v3296_v58 = vsel %vm3295_vm3, %v3278_v34, %v3294_v12  ;;  %v3460_v22 = vpack.c.bf16 %v3203_v36, %v3203_v36 }
 0x1d1   :  { %v3453_v30 = vpack.c.bf16 %v3154_v35, %v3154_v35  ;;  %v3307_v4 = vsel %vm3295_vm3, %v3286_v61, %v3306_v18  ;;  %v3195_v63 = vrot.slane %v3194_v37, 1  ;;  %v3210_v51 = vmax.f32 %v3208_v20, %v3209_v49 }
 0x1d2   :  { %v3189_v54 = vmax.f32 %v3187_v43, %v3188_v44  ;;  %v3298_v23 = vsel %vm3297_vm4, %v3279_v31, %v3296_v58  ;;  %v3289_v26 = vunpack.c.l.b16 %v3460_v22 }
 0x1d3   :  { %v3282_v60 = vunpack.c.l.b16 %v3453_v30  ;;  %v3300_v6 = vsel %vm3299_vm5, %v3280_v56, %v3298_v23  ;;  %v3196_v7 = vmax.f32 %v3194_v37, %v3195_v63  ;;  %v3461_v13 = vpack.c.bf16 %v3210_v51, %v3210_v51 }
 0x1d4   :  { %v3458_v45 = vpack.c.bf16 %v3189_v54, %v3189_v54  ;;  %v3302_v14 = vsel %vm3301_vm6, %v3281_v57, %v3300_v6 }
 0x1d5   :  { %v3304_v59 = vsel %vm3303_vm7, %v3282_v60, %v3302_v14  ;;  %v3459_v17 = vpack.c.bf16 %v3196_v7, %v3196_v7  ;;  %v3290_v46 = vunpack.c.l.b16 %v3461_v13 }
 0x1d6   :  { %v3287_v2 = vunpack.c.l.b16 %v3458_v45  ;;  %v3312_v10 = vpack.c.b16 %v3304_v59, %v3304_v59 }
 0x1d7   :  { %v3288_v16 = vunpack.c.l.b16 %v3459_v17 }
 0x1d8   :  { %v3308_v40 = vsel %vm3297_vm4, %v3287_v2, %v3307_v4  ;;  %3316 = vst [vmem:[#allocation7] sm:$0xf] %v3312_v10 }
 0x1d9   :  { %v3309_v48 = vsel %vm3299_vm5, %v3288_v16, %v3308_v40 }
 0x1da   :  { %v3310_v33 = vsel %vm3301_vm6, %v3289_v26, %v3309_v48 }
 0x1db   :  { %v3311_v29 = vsel %vm3303_vm7, %v3290_v46, %v3310_v33 }
 0x1dc   :  { %v3313_v41 = vpack.c.b16 %v3311_v29, %v3311_v29 }
 0x1de   :  { %3317 = vst [vmem:[#allocation7 + $0x4] sm:$0xf] %v3313_v41 }
 0x1df   :  { %3604 = shalt.err (!%p3601_p6)
}
 0x1e0   :  { %s3605_s15 = scalar_lea.hbm %s4740_s3, 128 }
 0x1e1   :  { %p3606_p7 = scmp.ne.s32.totalorder %s4740_s3, %s3605_s15  ;;  %p3609_p8 = scmp.lt.u32.totalorder %s3605_s15, %s4740_s3 }
 0x1e3   :  { %p3611_p9 = pnand %p3609_p8, %p3606_p7 }
 0x1e5   :  { %3614 = shalt.err (!%p3611_p9)
}
 0x1e6   :  { %3329 = dma.vmem_to_hbm [thread:$0]  %s3324_s11, 128, %s4740_s3, [#allocation4], %s3622_s22, %s3622_s22, %s3623_s23  }
 0x1e7   :  { %3619 = dma.done.wait [#allocation4], 128  }
 0x1e8   :  { %3620 = vsyncadd [#allocation4], 4294967168 }
 0x1e9   :  { %3333 = vsyncpa [#allocation3], 1 }
 0x1ea   :  { %3334 = vsyncpa [#allocation6], 1 }
 0x1eb   :  { %3335 = vsyncpa [#allocation4], 1 }

</bundles_post_ra>
